<compile_context>
chip_gen: v7x
topology: tpu7x:2x2x1
jax: 0.10.0
libtpu: 0.0.40
codegen_flags: <defaults>
</compile_context>

<pallas_src>
import functools

import numpy as np
import jax
import jax.numpy as jnp
from jax import lax
from jax.experimental import pallas as pl
from jax.experimental.pallas import tpu as pltpu


def _round_up(x, m):
    return ((x + m - 1) // m) * m


def _pick_tile(total, pref, align=128):
    """Largest multiple of `align` that divides `total` and is <= max(pref, align).
    `total` must be a multiple of `align`."""
    t = max(min(pref, total), align)
    t -= t % align
    t = max(t, align)
    while total % t:
        t -= align
    return t


def _default_vmem_limit():
    # Generation-aware scoped-VMEM limit: ~half of physical, capped at 64 MiB
    # (=> ~64 MiB on v5e/v6e's 128 MiB, ~32 MiB on v7x's 64 MiB).
    try:
        cap = int(getattr(pltpu.get_tpu_info(), "vmem_capacity_bytes", 0))
    except Exception:
        cap = 0
    if cap <= 0:
        return 48 * 1024 * 1024          # conservative fallback
    return min(64 * 1024 * 1024, cap // 2)


# ----------------------------- stage 1 kernel ------------------------------ #
def _legendre_kernel(x_ref, pct_ref, o_ref, *, precision):
    # x_ref:   (mt, bt, lmax_p)   spectral coeffs, m-major (real|imag folded in m grid)
    # pct_ref: (mt, lmax_p, nlat_t)
    # o_ref:   (mt, bt, nlat_t)
    acc = lax.dot_general(
        x_ref[...], pct_ref[...],
        dimension_numbers=(((2,), (1,)), ((0,), (0,))),
        preferred_element_type=jnp.float32,
        precision=precision)
    o_ref[...] = acc.astype(o_ref.dtype)


# ----------------------------- stage 2 kernel ------------------------------ #
def _fourier_kernel(a_ref, b_ref, o_ref, *, precision):
    # a_ref: (K_p, tm)  K-major slab from stage 1;  b_ref: (K_p, tn) irfft basis.
    # Contraction over dim 0 of both operands (in-tile LHS transpose rides the XLU).
    o_ref[...] = lax.dot_general(
        a_ref[...], b_ref[...],
        dimension_numbers=(((0,), (0,)), ((), ())),
        preferred_element_type=jnp.float32,
        precision=precision)


# ------------------------------ irfft basis -------------------------------- #
def _irfft_basis(mmax, nlon, mmax_p, nlon_p, dtype):
    """(2*mmax_p, nlon_p) matrix B so that for X = RL + i*IM,
    irfft(X, n=nlon, norm='forward')[n] = sum_c [RL ; IM][c] * B[c, n]
    (rows [0, mmax) carry RL, rows [mmax_p, mmax_p+mmax) carry IM)."""
    m = np.arange(mmax)[:, None].astype(np.float64)
    n = np.arange(nlon)[None, :].astype(np.float64)
    w = np.where(m == 0, 1.0, 2.0)
    w = np.where(2.0 * m == nlon, 1.0, w)        # Nyquist bin for even nlon
    ang = 2.0 * np.pi * m * n / nlon
    basis = np.zeros((2 * mmax_p, nlon_p), np.float32)
    basis[:mmax, :nlon] = (w * np.cos(ang)).astype(np.float32)
    basis[mmax_p:mmax_p + mmax, :nlon] = (-w * np.sin(ang)).astype(np.float32)
    return jnp.asarray(basis, dtype=dtype)


# -------------------------------- wrapper ----------------------------------- #
def inverse_real_sht(x, pct, nlat, nlon, *,
                     bt=128, mt=8, nlat_tile=512,
                     tm=512, tn=1024,
                     precision=lax.Precision.DEFAULT,
                     vmem_limit_bytes=None):
    """Pallas equivalent of InverseRealSHT.forward.

    x:   complex64 array of shape (..., lmax, mmax)
    pct: float32 array of shape (mmax, lmax, nlat)   (precomputed Legendre table)
    returns float32 array of shape (..., nlat, nlon)

    precision: DEFAULT (bf16 operands, f32 accum) is the fast path; use
    lax.Precision.HIGH (bf16_3x) as the accuracy fallback before HIGHEST.
    """
    *lead, lmax, mmax = x.shape
    assert pct.shape == (mmax, lmax, nlat)
    assert mmax <= nlon // 2 + 1, "mmax > nlon//2+1 would alias in the irfft"
    b = int(np.prod(lead)) if lead else 1

    if vmem_limit_bytes is None:
        vmem_limit_bytes = _default_vmem_limit()
    budget = int(vmem_limit_bytes * 0.9)

    use_bf16 = (precision is None) or (precision == lax.Precision.DEFAULT)
    cdtype = jnp.bfloat16 if use_bf16 else jnp.float32
    cbytes = 2 if use_bf16 else 4

    # ---- stage-1 tiling -----------------------------------------------------
    lmax_p = _round_up(lmax, 128)
    nlat_pb = _round_up(nlat, 128)

    b_p = _round_up(b, 8)
    bt_e = _pick_tile(b_p, bt, align=8)
    mt_e = mt if b_p >= 64 else max(mt, 32)     # tiny batch: cover more m per step
    # large batch: keep x resident (read once) by widening the nlat tile
    nlat_t = _pick_tile(nlat_pb, nlat_tile if b_p < nlat_pb else nlat_pb)

    # shrink until double-buffered blocks fit the scoped VMEM budget
    # (keeps the un-tiled lmax contraction safe on v7x's 64 MiB VMEM).
    while True:
        foot = 2 * cbytes * (mt_e * bt_e * lmax_p          # x block
                             + mt_e * lmax_p * nlat_t      # pct block
                             + mt_e * bt_e * nlat_t)       # out block
        if foot <= budget:
            break
        if nlat_t > 128:
            nlat_t = _pick_tile(nlat_pb, nlat_t - 128)
        elif mt_e > 1:
            mt_e = max(1, mt_e // 2)
        elif bt_e > 8:
            bt_e = _pick_tile(b_p, max(8, bt_e // 2), align=8)
        else:
            break  # TODO(synk): tile the lmax contraction if even minimal blocks overflow

    mmax_p = _round_up(mmax, mt_e)
    nlat_p = nlat_pb
    n_mblk = mmax_p // mt_e
    K_p = 2 * mmax_p

    # ---- inputs: m-major, real/imag folded along the leading (m) axis -------
    xc = jnp.transpose(jnp.reshape(x, (b, lmax, mmax)), (2, 0, 1))   # (mmax, b, lmax)
    pad3 = ((0, mmax_p - mmax), (0, b_p - b), (0, lmax_p - lmax))
    xr = jnp.pad(jnp.real(xc).astype(cdtype), pad3)
    xi = jnp.pad(jnp.imag(xc).astype(cdtype), pad3)
    xri = jnp.concatenate([xr, xi], axis=0)                          # (2*mmax_p, b_p, lmax_p)

    pct_p = jnp.pad(jnp.asarray(pct, jnp.float32),
                    ((0, mmax_p - mmax), (0, lmax_p - lmax), (0, nlat_p - nlat))
                    ).astype(cdtype)

    # ---- stage 1: batched-over-m Legendre matmuls ----------------------------
    leg_kernel = functools.partial(_legendre_kernel, precision=precision)
    grid1 = (2 * mmax_p // mt_e, nlat_p // nlat_t, b_p // bt_e)      # batch innermost
    k_blk1 = nlat_p // nlat_t
    flops1 = 2 * (2 * mmax_p) * b_p * lmax_p * nlat_p
    bytes1 = (cbytes * (xri.size * k_blk1 + 2 * pct_p.size)          # x re-read per nlat tile
              + cbytes * (2 * mmax_p) * b_p * nlat_p)
    rlim = pl.pallas_call(
        leg_kernel,
        out_shape=jax.ShapeDtypeStruct((2 * mmax_p, b_p, nlat_p), cdtype),
        grid=grid1,
        in_specs=[
            pl.BlockSpec((mt_e, bt_e, lmax_p), lambda m, k, i: (m, i, 0)),
            pl.BlockSpec((mt_e, lmax_p, nlat_t),
                         lambda m, k, i: (m % n_mblk, 0, k)),        # real & imag share pct
        ],
        out_specs=pl.BlockSpec((mt_e, bt_e, nlat_t), lambda m, k, i: (m, i, k)),
        compiler_params=pltpu.CompilerParams(
            dimension_semantics=("parallel", "parallel", "parallel"),
            vmem_limit_bytes=vmem_limit_bytes),
        cost_estimate=pl.CostEstimate(flops=int(flops1), transcendentals=0,
                                      bytes_accessed=int(bytes1)),
    )(xri, pct_p)

    # ---- stage 2: (K_p, M_p)^T-contraction with the irfft basis -------------
    M_p = b_p * nlat_p
    lhs = jnp.reshape(rlim, (K_p, M_p))     # trailing-dim collapse: layout-free
    nlon_p = _round_up(nlon, 128)

    tm_e = _pick_tile(M_p, tm)
    tn_e = _pick_tile(nlon_p, tn)
    while True:                              # fit double-buffered tiles in VMEM
        foot = 2 * cbytes * K_p * (tm_e + tn_e) + 2 * 4 * tm_e * tn_e
        if foot <= budget:
            break
        if tn_e > 128:
            tn_e = _pick_tile(nlon_p, tn_e - 128)
        elif tm_e > 128:
            tm_e = _pick_tile(M_p, tm_e - 128)
        else:
            break  # TODO(synk): re-introduce a K grid axis + f32 accumulator for huge mmax
    # megacore (v7x): keep >=2 blocks across the parallel grid
    if (M_p // tm_e) * (nlon_p // tn_e) < 2:
        if M_p >= 256:
            tm_e = _pick_tile(M_p, M_p // 2)
        elif nlon_p >= 256:
            tn_e = _pick_tile(nlon_p, nlon_p // 2)

    basis = _irfft_basis(mmax, nlon, mmax_p, nlon_p, cdtype)

    mm_kernel = functools.partial(_fourier_kernel, precision=precision)
    m_blk2 = M_p // tm_e
    flops2 = 2 * M_p * K_p * nlon_p
    bytes2 = (cbytes * (K_p * M_p + K_p * nlon_p * m_blk2)           # basis re-read per M tile
              + 4 * M_p * nlon_p)
    out_flat = pl.pallas_call(
        mm_kernel,
        out_shape=jax.ShapeDtypeStruct((M_p, nlon_p), jnp.float32),
        grid=(m_blk2, nlon_p // tn_e),
        in_specs=[
            pl.BlockSpec((K_p, tm_e), lambda i, j: (0, i)),
            pl.BlockSpec((K_p, tn_e), lambda i, j: (0, j)),
        ],
        out_specs=pl.BlockSpec((tm_e, tn_e), lambda i, j: (i, j)),
        compiler_params=pltpu.CompilerParams(
            dimension_semantics=("parallel", "parallel"),
            vmem_limit_bytes=vmem_limit_bytes),
        cost_estimate=pl.CostEstimate(flops=int(flops2), transcendentals=0,
                                      bytes_accessed=int(bytes2)),
    )(lhs, basis)

    out = jnp.reshape(out_flat, (b_p, nlat_p, nlon_p))[:b, :nlat, :nlon]
    return jnp.reshape(out, (*lead, nlat, nlon))


if __name__ == "__main__":
    # Module config: grid='lobatto' -> lmax = nlat - 1, mmax = nlon // 2 + 1
    nlat, nlon = 8, 16
    lmax = nlat - 1
    mmax = nlon // 2 + 1

    key = jax.random.PRNGKey(0)
    k1, k2, k3 = jax.random.split(key, 3)

    # Deterministic synthetic stand-in for the precomputed associated-Legendre
    # table (shape (mmax, lmax, nlat), as built in __init__).
    # TODO(synk): real module fills pct via _precompute_legpoly on Lobatto nodes.
    pct = jax.random.normal(k1, (mmax, lmax, nlat), dtype=jnp.float32)

    lead = (2, 3)  # arbitrary leading "..." batch dims
    xr_in = jax.random.normal(k2, (*lead, lmax, mmax), dtype=jnp.float32)
    xi_in = jax.random.normal(k3, (*lead, lmax, mmax), dtype=jnp.float32)
    x = (xr_in + 1j * xi_in).astype(jnp.complex64)

    # float64 numpy reference replicating the torch forward exactly.
    xr64 = np.asarray(xr_in, np.float64)
    xi64 = np.asarray(xi_in, np.float64)
    pct64 = np.asarray(pct, np.float64)
    rl_ref = np.einsum("...lm,mlk->...km", xr64, pct64)
    im_ref = np.einsum("...lm,mlk->...km", xi64, pct64)
    ref = np.fft.irfft(rl_ref + 1j * im_ref, n=nlon, axis=-1, norm="forward")

    # 1) Performance path: DEFAULT precision, bf16 MXU operands, f32 accumulation.
    out_fast = jax.block_until_ready(inverse_real_sht(x, pct, nlat, nlon))
    assert out_fast.shape == (*lead, nlat, nlon)
    of = np.asarray(out_fast, np.float64)
    rel_rms = np.sqrt(np.mean((of - ref) ** 2) / np.mean(ref ** 2))
    assert rel_rms < 1e-2, f"fast-path relative RMS error too large: {rel_rms}"
    np.testing.assert_allclose(of, ref, rtol=5e-2, atol=0.03 * np.abs(ref).max())

    # 2) Tight validation against float64 reference (f32 operands, 6-pass MXU).
    out = jax.block_until_ready(
        inverse_real_sht(x, pct, nlat, nlon,
                         precision=lax.Precision.HIGHEST))
    assert out.shape == (*lead, nlat, nlon)
    np.testing.assert_allclose(np.asarray(out), ref, rtol=1e-3, atol=1e-3)

    print("KERNEL_OK")
</pallas_src>

<mosaic_0001>
module attributes {stable_mosaic.version = 11 : i64} {
  func.func @_legendre_kernel(%arg0: i32, %arg1: i32, %arg2: i32, %arg3: memref<32x8x128xbf16, #tpu.memory_space<vmem>>, %arg4: memref<32x128x128xbf16, #tpu.memory_space<vmem>>, %arg5: memref<32x8x128xbf16, #tpu.memory_space<vmem>>) attributes {dimension_semantics = [#tpu.dimension_semantics<parallel>, #tpu.dimension_semantics<parallel>, #tpu.dimension_semantics<parallel>], iteration_bounds = array<i64: 2, 1, 1>, scalar_prefetch = 0 : i64, scratch_operands = 0 : i64, tpu.core_type = #tpu.core_type<tc>, window_params = [{transform_indices = @transform_0, window_bounds = array<i64: 32, 8, 128>}, {transform_indices = @transform_1, window_bounds = array<i64: 32, 128, 128>}, {transform_indices = @transform_2, window_bounds = array<i64: 32, 8, 128>}]} {
    %c0 = arith.constant 0 : index
    %c0_0 = arith.constant 0 : index
    %c0_1 = arith.constant 0 : index
    %0 = vector.load %arg3[%c0, %c0_0, %c0_1] : memref<32x8x128xbf16, #tpu.memory_space<vmem>>, vector<32x8x128xbf16>
    %c0_2 = arith.constant 0 : index
    %c0_3 = arith.constant 0 : index
    %c0_4 = arith.constant 0 : index
    %1 = vector.load %arg4[%c0_2, %c0_3, %c0_4] : memref<32x128x128xbf16, #tpu.memory_space<vmem>>, vector<32x128x128xbf16>
    %cst = arith.constant dense<0.000000e+00> : vector<32x8x128xf32>
    %2 = tpu.matmul %0, %1, %cst {dimension_numbers = #tpu.dot_dimension_numbers<[2], [1], [1], [2], [0, 0, 0, 1, 1, 2], [0], [0]>} : vector<32x8x128xbf16>, vector<32x128x128xbf16>, vector<32x8x128xf32> -> vector<32x8x128xf32>
    %3 = arith.truncf %2 : vector<32x8x128xf32> to vector<32x8x128xbf16>
    %c0_5 = arith.constant 0 : index
    %c0_6 = arith.constant 0 : index
    %c0_7 = arith.constant 0 : index
    %4 = vector.load %arg5[%c0_5, %c0_6, %c0_7] : memref<32x8x128xbf16, #tpu.memory_space<vmem>>, vector<32x8x128xbf16>
    tpu.vector_store %arg5[%c0_5, %c0_6, %c0_7], %3 {strides = array<i32>} : memref<32x8x128xbf16, #tpu.memory_space<vmem>>, vector<32x8x128xbf16>,
    return
  }
  func.func @transform_0(%arg0: i32, %arg1: i32, %arg2: i32) -> (i32, i32, i32) {
    %c0_i32 = arith.constant 0 : i32
    %c0_i32_0 = arith.constant 0 : i32
    return %arg0, %arg2, %c0_i32 : i32, i32, i32
  }
  func.func @transform_1(%arg0: i32, %arg1: i32, %arg2: i32) -> (i32, i32, i32) {
    %c1_i32 = arith.constant 1 : i32
    %c0_i32 = arith.constant 0 : i32
    %0 = arith.cmpi eq, %c1_i32, %c0_i32 : i32
    %c1_i32_0 = arith.constant 1 : i32
    %1 = arith.select %0, %c1_i32_0, %c1_i32 : i32
    %2 = arith.remsi %arg0, %1 : i32
    %c0_i32_1 = arith.constant 0 : i32
    %3 = arith.cmpi ne, %2, %c0_i32_1 : i32
    %c0_i32_2 = arith.constant 0 : i32
    %4 = arith.cmpi slt, %2, %c0_i32_2 : i32
    %c0_i32_3 = arith.constant 0 : i32
    %5 = arith.cmpi slt, %1, %c0_i32_3 : i32
    %6 = arith.xori %4, %5 : i1
    %7 = arith.andi %6, %3 : i1
    %8 = arith.addi %2, %1 : i32
    %9 = arith.select %7, %8, %2 : i32
    %c0_i32_4 = arith.constant 0 : i32
    %c0_i32_5 = arith.constant 0 : i32
    return %9, %c0_i32_4, %arg1 : i32, i32, i32
  }
  func.func @transform_2(%arg0: i32, %arg1: i32, %arg2: i32) -> (i32, i32, i32) {
    %c0_i32 = arith.constant 0 : i32
    return %arg0, %arg2, %arg1 : i32, i32, i32
  }
}

</mosaic_0001>

<bundles_post_ra>
// kernel: tpu_custom_call.1
= control target key start
LH: loop header
LB: loop body
LE: loop exit
PB: predicated region body
PF: predicated region fallthrough
CT: control target
= control target key end

     0   :  { %7 = vsyncpa [#allocation3], 0  ;;  %s6159_s0 = inlined_call_operand.hbm [shape: bf16[64,8,128], index: 0, kind: input, shape index: {}]   ;;  %s6160_s1 = inlined_call_operand.hbm [shape: bf16[32,128,128], index: 1, kind: input, shape index: {}]   ;;  %s6161_s2 = inlined_call_operand.hbm [shape: bf16[64,8,128], index: 2, kind: output, shape index: {}]  }
   0x1   :  { %9 = vsyncpa [#allocation3 + $0x1], 0 }
   0x2   :  { %10 = vsyncpa [#allocation6], 0 }
   0x3   :  { %11 = vsyncpa [#allocation4], 0 }
   0x4   :  { %13 = vsyncpa [#allocation4 + $0x1], 0  ;;  %s5557_s9 = smov 0   ;;  %s5559_s10 = smov 0  }
   0x5   :  { %s5561_s11 = smov 0   ;;  %s5563_s12 = smov 0  }
   0x6   :  { %s5565_s13 = smov 0   ;;  %s5567_s14 = smov 0  }
   0x7 LB: > { %s3754_s15 = sadd.s32 4294967295, %s5531_s14   ;;  %s3755_s16 = sadd.s32 4294967294, %s5531_s14   ;;  %s5531_s14 = sphi %s5567_s14, %s19_s14   ;;  %s5527_s13 = sphi %s5565_s13, %s6185_s13   ;;  %s5523_s12 = sphi %s5563_s12, %s6184_s12   ;;  %s5519_s11 = sphi %s5561_s11, %s6183_s11   ;;  %s5515_s10 = sphi %s5559_s10, %s6182_s10   ;;  %s5511_s9 = sphi %s5557_s9, %s6181_s9  }
   0x8   : > { %p60_p0 = scmp.ne.s32.totalorder %s5515_s10, %s5511_s9  ;;  %p5591_p1 = scmp.eq.s32.totalorder %s3754_s15, 0 }
   0x9   : > { %p5595_p2 = scmp.eq.s32.totalorder %s3754_s15, 1  ;;  %p120_p3 = scmp.eq.s32.totalorder %s3755_s16, 1 }
   0xa   : > { %s6166_s17 = scalar_select %p5591_p1, 1, 0 }
   0xb   : > { %s6167_s18 = scalar_select %p5595_p2, 1, 0 }
   0xc   : > { %p5601_p4 = por %p5591_p1, %p60_p0  ;;  %p3756_p5 = scmp.ge.s32.totalorder %s5531_s14, 1 }
   0xd   : > { %p5606_p6 = por %p120_p3, %p60_p0  ;;  %p127_p7 = scmp.lt.s32.totalorder %s5531_s14, 3 }
   0xe   : > { %s6168_s19 = scalar_select %p5601_p4, 1, 0 }
   0xf   : > { %s6169_s20 = scalar_select %p5606_p6, 1, 0 }
  0x10   : > { %p5611_p8 = pnand %p3756_p5, %p127_p7  ;;  %s5533_s22 = smov [#allocation5]  }
  0x11   : > { %s141_s23 = sshll.u32 %s5533_s22, 4  ;;  %s38_s25 = sadd.s32 1, %s5527_s13  ;;  %s142_s23 = int_to_ptr.vmem [resolvable:$true] %s141_s23 }
  0x12   : > { %s6170_s21 = scalar_select %p5611_p8, 1, 0 }
  0x13   : > { %p5060_p9 = pneg %p5611_p8  ;;  %s5387_s28 = scalar_lea.hbm %s6160_s1, 32768 }
  0x14   : > { %p5388_p12 = scmp.ne.s32.totalorder %s6160_s1, %s5387_s28  ;;  %p5394_p5 = scmp.lt.u32.totalorder %s5387_s28, %s6160_s1 }
  0x15   : > { %p5620_p11 = pnand %p5060_p9, %p5591_p1 }
  0x17   : > { %p5389_p13 = pneg %p5620_p11 }
  0x19   : > { %p5390_p0 = pnand %p5389_p13, %p5388_p12 }
  0x1b   : > { %p5391_p3 = pneg %p5390_p0 }
  0x1d   : > { %p5396_p7 = pnand %p5394_p5, %p5391_p3 }
  0x1f   : > { %5399 = shalt.err (!%p5396_p7)
}
  0x20   : > { %s5400_s5 = scalar_lea.vmem %s142_s23, 32768  ;;  %p5408_p1 = scmp.lt.s32.totalorder %s142_s23, %s142_s23 }
  0x21   : > { %p5401_p9 = scmp.ne.s32.totalorder %s142_s23, %s5400_s5  ;;  %p5409_p4 = scmp.lt.s32.totalorder %s5400_s5, %s5400_s5 }
  0x23   : > { %p5403_p10 = pnand %p5401_p9, %p5389_p13  ;;  %p5410_p8 = por %p5409_p4, %p5408_p1 }
  0x25   : > { %p5404_p6 = pneg %p5403_p10 }
  0x27   : > { %p5411_p2 = pnand %p5410_p8, %p5404_p6 }
  0x29   : > { %5414 = shalt.err (!%p5411_p2)
}
  0x2a   : > { %s5534_s6 = smov 64   ;;  %s5535_s7 = smov 4  }
  0x2b   : > { %5063 = dma.hbm_to_vmem [thread:$0]  (!%p5620_p11), %s6160_s1, 32768, %s142_s23, [#allocation6], %s5534_s6, %s5534_s6, %s5535_s7  }
  0x2c   : > { %p40_p1 = scmp.ge.s32.totalorder %s38_s25, 2  ;;  %s47_s16 = sadd.s32 1, %s5519_s11 }
  0x2d   : > { %p54_p2 = scmp.ne.s32.totalorder %s5519_s11, %s5515_s10  ;;  %p55_p4 = scmp.eq.s32.totalorder %s5531_s14, 0 }
  0x2e   : > { %s6187_s25 = smov (%p40_p1, %s38_s25), 0  ;;  %p6173_p8 = scmp.ne.s32.totalorder %s6167_s18, 0 }
  0x2f   : > { %p5650_p6 = por %p55_p4, %p54_p2  ;;  %s42_s26 = ssub.s32 %s5527_s13, %s6187_s25 }
  0x30   : > { %p5656_p10 = por %p6173_p8, %p54_p2  ;;  %p5073_p12 = scmp.lt.s32.totalorder %s5531_s14, 2 }
  0x31   : > { %p45_p11 = scmp.eq.s32.totalorder %s42_s26, 0  ;;  %s155_s23 = sand.u32 1, %s5519_s11  }
  0x32   : > { %s3759_s27 = sshll.u32 %s155_s23, 7  ;;  %s4027_s29 = sshll.u32 %s5527_s13, 11 }
  0x33   : > { %s5665_s28 = scalar_select %p45_p11, %s5519_s11, %s47_s16  }
  0x34   : > { %s5671_s4 = scalar_lea.hbm %s6159_s0, %s4027_s29  ;;  %s159_s18 = scalar_lea.vmem [#allocation2], %s3759_s27 }
  0x35   : > { %s167_s5 = sshll.u32 %s159_s18, 4  ;;  %p5677_p13 = pnand %p5073_p12, %p5650_p6  ;;  %s5673_s5 = int_to_ptr.vmem [resolvable:$true] %s167_s5 }
  0x36   : > { %s5681_s15 = scalar_lea.sflag [#allocation3], %s155_s23  ;;  %s5415_s16 = scalar_lea.hbm %s5671_s4, 2048 }
  0x37   : > { %p5416_p0 = scmp.ne.s32.totalorder %s5671_s4, %s5415_s16  ;;  %p5417_p3 = pneg %p5677_p13 }
  0x38   : > { %s5420_s22 = scalar_lea.hbm %s6159_s0, 4096  ;;  %p5421_p9 = scmp.lt.u32.totalorder %s5671_s4, %s6159_s0 }
  0x39   : > { %p5418_p5 = pnand %p5417_p3, %p5416_p0  ;;  %p5422_p1 = scmp.lt.u32.totalorder %s5420_s22, %s5415_s16 }
  0x3a   : > { %p5424_p4 = scmp.lt.u32.totalorder %s5415_s16, %s5671_s4 }
  0x3b   : > { %p5419_p7 = pneg %p5418_p5  ;;  %p5423_p2 = por %p5422_p1, %p5421_p9 }
  0x3d   : > { %p5425_p6 = por %p5424_p4, %p5423_p2 }
  0x3f   : > { %p5426_p8 = pnand %p5425_p6, %p5419_p7 }
  0x41   : > { %5429 = shalt.err (!%p5426_p8)
}
  0x42   : > { %s5430_s23 = scalar_lea.vmem %s5673_s5, 2048  ;;  %s5536_s3 = smov [#allocation2]  }
  0x43   : > { %p5431_p12 = scmp.ne.s32.totalorder %s5673_s5, %s5430_s23  ;;  %s5435_s18 = sshll.u32 %s5536_s3, 4  ;;  %s5436_s18 = int_to_ptr.vmem [resolvable:$false] %s5435_s18 }
  0x44   : > { %s5437_s26 = scalar_lea.vmem %s5436_s18, 4096  ;;  %p5438_p5 = scmp.lt.s32.totalorder %s5673_s5, %s5436_s18 }
  0x45   : > { %p5433_p11 = pnand %p5431_p12, %p5417_p3  ;;  %p5439_p9 = scmp.lt.s32.totalorder %s5437_s26, %s5430_s23 }
  0x47   : > { %p5434_p0 = pneg %p5433_p11  ;;  %p5440_p1 = por %p5439_p9, %p5438_p5 }
  0x49   : > { %p5441_p2 = pnand %p5440_p1, %p5434_p0 }
  0x4b   : > { %5444 = shalt.err (!%p5441_p2)
}
  0x4c   : > { %5067 = dma.hbm_to_vmem [thread:$0]  (!%p5677_p13), %s5671_s4, 2048, %s5673_s5, %s5681_s15, %s5534_s6, %s5534_s6, %s5535_s7  }
  0x4d   : > { %p6176_p3 = scmp.ne.s32.totalorder %s6170_s21, 0 }
  0x4e   : > { %s5715_s16 = sand.u32 (!%p6176_p3), 1, %s5515_s10   ;;  %p6177_p7 = scmp.ne.s32.totalorder (!%p6176_p3), %s6168_s19, 0 }
  0x4f   : > { %179 = sbr.rel (%p6176_p3) target bundleno = 833 (0x341), region = 28  ;;  %s3763_s27 = sshll.u32 (!%p6176_p3), %s5715_s16, 7 }
  0x50   : > { %s182_s22 = scalar_lea.sflag (!%p6176_p3), [#allocation3], %s5715_s16  ;;  %s5721_s8 = scalar_lea.vmem (!%p6176_p3), [#allocation2], %s3763_s27 }
  0x56   : > { %5498 = dma.done.wait (%p6177_p7), %s182_s22, 2048  }
  0x57   : > { %5500 = vsyncadd (%p6177_p7), %s182_s22, 4294965248  ;;  %p6178_p13 = scmp.ne.s32.totalorder %s6166_s17, 0 }
  0x59   : > { %5502 = dma.done.wait (%p6178_p13), [#allocation6], 32768  }
  0x5a   : > { %5504 = vsyncadd (%p6178_p13), [#allocation6], 4294934528  ;;  %v5537_v0 = vmov 0.0   ;;  %vm5538_vm0 = vmmov 0   ;;  %v5131_v1 = vld [vmem:[#allocation5] sm:$0xff]   ;;  %v5133_v3 = vld [vmem:[#allocation5 + $0x8] sm:$0xff]  }
  0x5b   : > { %4412 = vmatprep.subr.bf16.mxu0 %v5537_v0  ;;  %4432 = vmatprep.subr.bf16.mxu1 %v5537_v0  ;;  %v5132_v2 = vld [vmem:[#allocation5 + $0x40] sm:$0xff]   ;;  %v5134_v4 = vld [vmem:[#allocation5 + $0x48] sm:$0xff]   ;;  %v5135_v5 = vld [vmem:[#allocation5 + $0x10] sm:$0xff]   ;;  %s5904_s17 = scalar_lea.vmem [#allocation7], %s3763_s27  ;;  %s4028_s19 = sshll.u32 %s5523_s12, 11 }
  0x5c   : > { %4428 = vmatprep.mubr.msk.bf16.mxu0 %vm5538_vm0, %v5537_v0  ;;  %4448 = vmatprep.mubr.msk.bf16.mxu1 %vm5538_vm0, %v5537_v0  ;;  %v5136_v6 = vld [vmem:[#allocation5 + $0x50] sm:$0xff]   ;;  %v5137_v7 = vld [vmem:[#allocation5 + $0x18] sm:$0xff]   ;;  %v5139_v9 = vld [vmem:[#allocation5 + $0x20] sm:$0xff]   ;;  %s3653_s21 = sshll.u32 %s5904_s17, 4  ;;  %s6107_s4 = scalar_lea.hbm %s6161_s2, %s4028_s19  ;;  %s6109_s21 = int_to_ptr.vmem [resolvable:$true] %s3653_s21 }
  0x5d   : > { %4413 = vmatpush3.bf16.msra.mxu0 %v5131_v1  ;;  %4433 = vmatpush3.bf16.msra.mxu1 %v5132_v2  ;;  %v5138_v8 = vld [vmem:[#allocation5 + $0x58] sm:$0xff]   ;;  %v5140_v10 = vld [vmem:[#allocation5 + $0x60] sm:$0xff]   ;;  %v5141_v11 = vld [vmem:[#allocation5 + $0x28] sm:$0xff]   ;;  %s3638_s12 = scalar_lea.sflag [#allocation4], %s5715_s16  ;;  %s5445_s5 = scalar_lea.vmem %s6109_s21, 2048 }
  0x5e   : > { %4414 = vmatprep.subr.bf16.mxu0 %v5537_v0  ;;  %4434 = vmatprep.subr.bf16.mxu1 %v5537_v0  ;;  %v5142_v12 = vld [vmem:[#allocation5 + $0x68] sm:$0xff]   ;;  %v5143_v13 = vld [vmem:[#allocation5 + $0x30] sm:$0xff]   ;;  %v5145_v15 = vld [vmem:[#allocation5 + $0x38] sm:$0xff]   ;;  %p5446_p4 = scmp.ne.s32.totalorder %s6109_s21, %s5445_s5  ;;  %s5539_s15 = smov [#allocation7]  }
  0x5f   : > { %v5144_v14 = vld [vmem:[#allocation5 + $0x70] sm:$0xff]   ;;  %v5146_v16 = vld [vmem:[#allocation5 + $0x78] sm:$0xff]   ;;  %v213_v17 = vld [vmem:[%s5721_s8] sm:$0xf]  ;;  %s5449_s29 = sshll.u32 %s5539_s15, 4  ;;  %s5450_s29 = int_to_ptr.vmem [resolvable:$false] %s5449_s29 }
  0x60   : > { %v214_v18 = vld [vmem:[%s5721_s8 + $0x4] sm:$0xf]  ;;  %v5149_v21 = vld [vmem:[#allocation5 + $0x88] sm:$0xff]   ;;  %v5151_v23 = vld [vmem:[#allocation5 + $0x90] sm:$0xff]   ;;  %p5447_p6 = pnand %p5446_p4, %p5656_p10  ;;  %s5451_s30 = scalar_lea.vmem %s5450_s29, 4096 }
  0x61   : > { %4415 = vmatpush3.bf16.msra.mxu0 %v5133_v3  ;;  %4435 = vmatpush3.bf16.msra.mxu1 %v5134_v4  ;;  %v5147_v19 = vld [vmem:[#allocation5 + $0x80] sm:$0xff]   ;;  %v5150_v22 = vld [vmem:[#allocation5 + $0xc8] sm:$0xff]   ;;  %v5152_v24 = vld [vmem:[#allocation5 + $0xd0] sm:$0xff]   ;;  %p5452_p12 = scmp.lt.s32.totalorder %s6109_s21, %s5450_s29  ;;  %p5453_p11 = scmp.lt.s32.totalorder %s5451_s30, %s5445_s5 }
  0x62   : > { %4416 = vmatprep.subr.bf16.mxu0 %v5537_v0  ;;  %4436 = vmatprep.subr.bf16.mxu1 %v5537_v0  ;;  %v5148_v20 = vld [vmem:[#allocation5 + $0xc0] sm:$0xff]   ;;  %v5153_v25 = vld [vmem:[#allocation5 + $0x98] sm:$0xff]   ;;  %v5157_v29 = vld [vmem:[#allocation5 + $0xa8] sm:$0xff]   ;;  %p5448_p8 = pneg %p5447_p6 }
  0x63   : > { %v5154_v26 = vld [vmem:[#allocation5 + $0xd8] sm:$0xff]   ;;  %v5155_v27 = vld [vmem:[#allocation5 + $0xa0] sm:$0xff]   ;;  %v5158_v30 = vld [vmem:[#allocation5 + $0xe8] sm:$0xff]   ;;  %p5454_p0 = por %p5453_p11, %p5452_p12 }
  0x64   : > { %v5156_v28 = vld [vmem:[#allocation5 + $0xe0] sm:$0xff]   ;;  %v5159_v31 = vld [vmem:[#allocation5 + $0xb0] sm:$0xff]   ;;  %v5161_v33 = vld [vmem:[#allocation5 + $0xb8] sm:$0xff]  }
  0x65   : > { %4417 = vmatpush3.bf16.msra.mxu0 %v5135_v5  ;;  %4437 = vmatpush3.bf16.msra.mxu1 %v5136_v6  ;;  %v5160_v32 = vld [vmem:[#allocation5 + $0xf0] sm:$0xff]   ;;  %v5162_v34 = vld [vmem:[#allocation5 + $0xf8] sm:$0xff]   ;;  %v215_v35 = vld [vmem:[%s5721_s8 + $0x8] sm:$0xf]  ;;  %p5455_p5 = pnand %p5454_p0, %p5448_p8 }
  0x66   : > { %4418 = vmatprep.subr.bf16.mxu0 %v5537_v0  ;;  %4438 = vmatprep.subr.bf16.mxu1 %v5537_v0  ;;  %v216_v36 = vld [vmem:[%s5721_s8 + $0xc] sm:$0xf]  ;;  %v5163_v37 = vld [vmem:[#allocation5 + $0x100] sm:$0xff]   ;;  %v5167_v41 = vld [vmem:[#allocation5 + $0x110] sm:$0xff]  }
  0x67   : > { %v5164_v38 = vld [vmem:[#allocation5 + $0x140] sm:$0xff]   ;;  %v5165_v39 = vld [vmem:[#allocation5 + $0x108] sm:$0xff]   ;;  %v5168_v42 = vld [vmem:[#allocation5 + $0x150] sm:$0xff]  }
  0x68   : > { %v5166_v40 = vld [vmem:[#allocation5 + $0x148] sm:$0xff]   ;;  %v5169_v43 = vld [vmem:[#allocation5 + $0x118] sm:$0xff]   ;;  %v5171_v45 = vld [vmem:[#allocation5 + $0x120] sm:$0xff]  }
  0x69   : > { %4419 = vmatpush3.bf16.msra.mxu0 %v5137_v7  ;;  %4439 = vmatpush3.bf16.msra.mxu1 %v5138_v8  ;;  %v5170_v44 = vld [vmem:[#allocation5 + $0x158] sm:$0xff]   ;;  %v5172_v46 = vld [vmem:[#allocation5 + $0x160] sm:$0xff]   ;;  %v5173_v47 = vld [vmem:[#allocation5 + $0x128] sm:$0xff]  }
  0x6a   : > { %4420 = vmatprep.subr.bf16.mxu0 %v5537_v0  ;;  %4440 = vmatprep.subr.bf16.mxu1 %v5537_v0  ;;  %v5174_v48 = vld [vmem:[#allocation5 + $0x168] sm:$0xff]   ;;  %v5175_v49 = vld [vmem:[#allocation5 + $0x130] sm:$0xff]   ;;  %v5177_v51 = vld [vmem:[#allocation5 + $0x138] sm:$0xff]  }
  0x6b   : > { %v5176_v50 = vld [vmem:[#allocation5 + $0x170] sm:$0xff]   ;;  %v5178_v52 = vld [vmem:[#allocation5 + $0x178] sm:$0xff]   ;;  %v5179_v55 = vld [vmem:[#allocation5 + $0x180] sm:$0xff]  }
  0x6c   : > { %v217_v53 = vld [vmem:[%s5721_s8 + $0x10] sm:$0xf]  ;;  %v218_v54 = vld [vmem:[%s5721_s8 + $0x14] sm:$0xf]  ;;  %v5180_v56 = vld [vmem:[#allocation5 + $0x1c0] sm:$0xff]  }
  0x6d   : > { %4421 = vmatpush3.bf16.msra.mxu0 %v5139_v9  ;;  %4441 = vmatpush3.bf16.msra.mxu1 %v5140_v10  ;;  %v5181_v57 = vld [vmem:[#allocation5 + $0x188] sm:$0xff]   ;;  %v5183_v59 = vld [vmem:[#allocation5 + $0x190] sm:$0xff]   ;;  %v5185_v61 = vld [vmem:[#allocation5 + $0x198] sm:$0xff]  }
  0x6e   : > { %4422 = vmatprep.subr.bf16.mxu0 %v5537_v0  ;;  %4442 = vmatprep.subr.bf16.mxu1 %v5537_v0  ;;  %v5182_v58 = vld [vmem:[#allocation5 + $0x1c8] sm:$0xff]   ;;  %v5184_v60 = vld [vmem:[#allocation5 + $0x1d0] sm:$0xff]   ;;  %v5186_v62 = vld [vmem:[#allocation5 + $0x1d8] sm:$0xff]  }
  0x6f   : > { %v5187_v63 = vld [vmem:[#allocation5 + $0x1a0] sm:$0xff]   ;;  %v5189_v2 = vld [vmem:[#allocation5 + $0x1a8] sm:$0xff]   ;;  %v5191_v4 = vld [vmem:[#allocation5 + $0x1b0] sm:$0xff]  }
  0x70   : > { %v5188_v1 = vld [vmem:[#allocation5 + $0x1e0] sm:$0xff]   ;;  %v5190_v3 = vld [vmem:[#allocation5 + $0x1e8] sm:$0xff]   ;;  %v5192_v5 = vld [vmem:[#allocation5 + $0x1f0] sm:$0xff]  }
  0x71   : > { %4423 = vmatpush3.bf16.msra.mxu0 %v5141_v11  ;;  %4443 = vmatpush3.bf16.msra.mxu1 %v5142_v12  ;;  %v5193_v6 = vld [vmem:[#allocation5 + $0x1b8] sm:$0xff]   ;;  %v5195_v10 = vld [vmem:[#allocation5 + $0x200] sm:$0xff]   ;;  %v5197_v12 = vld [vmem:[#allocation5 + $0x208] sm:$0xff]  }
  0x72   : > { %4424 = vmatprep.subr.bf16.mxu0 %v5537_v0  ;;  %4444 = vmatprep.subr.bf16.mxu1 %v5537_v0  ;;  %v5194_v7 = vld [vmem:[#allocation5 + $0x1f8] sm:$0xff]   ;;  %v5196_v11 = vld [vmem:[#allocation5 + $0x240] sm:$0xff]  }
  0x73   : > { %v219_v8 = vld [vmem:[%s5721_s8 + $0x18] sm:$0xf]  ;;  %v220_v9 = vld [vmem:[%s5721_s8 + $0x1c] sm:$0xf] }
  0x75   : > { %4425 = vmatpush3.bf16.msra.mxu0 %v5143_v13  ;;  %4445 = vmatpush3.bf16.msra.mxu1 %v5144_v14  ;;  %v5198_v13 = vld [vmem:[#allocation5 + $0x248] sm:$0xff]   ;;  %v5199_v14 = vld [vmem:[#allocation5 + $0x210] sm:$0xff]  }
  0x76   : > { %4426 = vmatprep.subr.bf16.mxu0 %v5537_v0  ;;  %4446 = vmatprep.subr.bf16.mxu1 %v5537_v0 }
  0x79   : > { %4427 = vmatpush3.bf16.msra.mxu0 %v5145_v15  ;;  %4447 = vmatpush3.bf16.msra.mxu1 %v5146_v16  ;;  %v5200_v15 = vld [vmem:[#allocation5 + $0x250] sm:$0xff]   ;;  %v5201_v16 = vld [vmem:[#allocation5 + $0x218] sm:$0xff]  }
  0x7a   : > { %4452 = vmatprep.subr.bf16.mxu0 %v5537_v0  ;;  %4472 = vmatprep.subr.bf16.mxu1 %v5537_v0 }
  0x7c   : > { %4429 = vmatmul.mubr.bf16.vlgmr.msra.gmra.mrb[0].mxu0 %v213_v17  ;;  %4449 = vmatmul.mubr.bf16.vlgmr.msra.gmra.mrb[0].mxu1 %v214_v18  ;;  %v5202_v17 = vld [vmem:[#allocation5 + $0x258] sm:$0xff]   ;;  %v5203_v18 = vld [vmem:[#allocation5 + $0x220] sm:$0xff]  }
  0x7d   : > { %4453 = vmatpush3.bf16.msra.mxu0 %v5147_v19  ;;  %4473 = vmatpush3.bf16.msra.mxu1 %v5148_v20  ;;  %v5204_v19 = vld [vmem:[#allocation5 + $0x260] sm:$0xff]   ;;  %v5205_v20 = vld [vmem:[#allocation5 + $0x228] sm:$0xff]  }
  0x7e   : > { %4454 = vmatprep.subr.bf16.mxu0 %v5537_v0  ;;  %4474 = vmatprep.subr.bf16.mxu1 %v5537_v0 }
  0x7f   : > { %4468 = vmatprep.mubr.msk.bf16.mxu0 %vm5538_vm0, %v5537_v0  ;;  %4488 = vmatprep.mubr.msk.bf16.mxu1 %vm5538_vm0, %v5537_v0 }
  0x81   : > { %4455 = vmatpush3.bf16.msra.mxu0 %v5149_v21  ;;  %4475 = vmatpush3.bf16.msra.mxu1 %v5150_v22  ;;  %v5206_v21 = vld [vmem:[#allocation5 + $0x268] sm:$0xff]   ;;  %v5207_v22 = vld [vmem:[#allocation5 + $0x230] sm:$0xff]  }
  0x82   : > { %4456 = vmatprep.subr.bf16.mxu0 %v5537_v0  ;;  %4476 = vmatprep.subr.bf16.mxu1 %v5537_v0 }
  0x85   : > { %4457 = vmatpush3.bf16.msra.mxu0 %v5151_v23  ;;  %4477 = vmatpush3.bf16.msra.mxu1 %v5152_v24  ;;  %v5208_v23 = vld [vmem:[#allocation5 + $0x270] sm:$0xff]   ;;  %v5209_v24 = vld [vmem:[#allocation5 + $0x238] sm:$0xff]  }
  0x86   : > { %4458 = vmatprep.subr.bf16.mxu0 %v5537_v0  ;;  %4478 = vmatprep.subr.bf16.mxu1 %v5537_v0 }
  0x89   : > { %4459 = vmatpush3.bf16.msra.mxu0 %v5153_v25  ;;  %4479 = vmatpush3.bf16.msra.mxu1 %v5154_v26  ;;  %v5210_v25 = vld [vmem:[#allocation5 + $0x278] sm:$0xff]   ;;  %v221_v26 = vld [vmem:[%s5721_s8 + $0x20] sm:$0xf] }
  0x8a   : > { %4460 = vmatprep.subr.bf16.mxu0 %v5537_v0  ;;  %4480 = vmatprep.subr.bf16.mxu1 %v5537_v0 }
  0x8d   : > { %4461 = vmatpush3.bf16.msra.mxu0 %v5155_v27  ;;  %4481 = vmatpush3.bf16.msra.mxu1 %v5156_v28  ;;  %v222_v27 = vld [vmem:[%s5721_s8 + $0x24] sm:$0xf] }
  0x8e   : > { %4462 = vmatprep.subr.bf16.mxu0 %v5537_v0  ;;  %4482 = vmatprep.subr.bf16.mxu1 %v5537_v0  ;;  %v5211_v28 = vld [vmem:[#allocation5 + $0x280] sm:$0xff]  }
  0x91   : > { %4463 = vmatpush3.bf16.msra.mxu0 %v5157_v29  ;;  %4483 = vmatpush3.bf16.msra.mxu1 %v5158_v30  ;;  %v5212_v29 = vld [vmem:[#allocation5 + $0x2c0] sm:$0xff]   ;;  %v5213_v30 = vld [vmem:[#allocation5 + $0x288] sm:$0xff]  }
  0x92   : > { %4464 = vmatprep.subr.bf16.mxu0 %v5537_v0  ;;  %4484 = vmatprep.subr.bf16.mxu1 %v5537_v0 }
  0x95   : > { %4465 = vmatpush3.bf16.msra.mxu0 %v5159_v31  ;;  %4485 = vmatpush3.bf16.msra.mxu1 %v5160_v32  ;;  %v5214_v31 = vld [vmem:[#allocation5 + $0x2c8] sm:$0xff]   ;;  %v5215_v32 = vld [vmem:[#allocation5 + $0x290] sm:$0xff]  }
  0x96   : > { %4466 = vmatprep.subr.bf16.mxu0 %v5537_v0  ;;  %4486 = vmatprep.subr.bf16.mxu1 %v5537_v0 }
  0x99   : > { %4467 = vmatpush3.bf16.msra.mxu0 %v5161_v33  ;;  %4487 = vmatpush3.bf16.msra.mxu1 %v5162_v34  ;;  %v5216_v33 = vld [vmem:[#allocation5 + $0x2d0] sm:$0xff]   ;;  %v5217_v34 = vld [vmem:[#allocation5 + $0x298] sm:$0xff]  }
  0x9a   : > { %4492 = vmatprep.subr.bf16.mxu0 %v5537_v0  ;;  %4512 = vmatprep.subr.bf16.mxu1 %v5537_v0 }
  0x9c   : > { %4469 = vmatmul.mubr.bf16.vlgmr.msra.gmra.mrb[4].mxu0 %v215_v35  ;;  %4489 = vmatmul.mubr.bf16.vlgmr.msra.gmra.mrb[4].mxu1 %v216_v36  ;;  %v5218_v35 = vld [vmem:[#allocation5 + $0x2d8] sm:$0xff]   ;;  %v5219_v36 = vld [vmem:[#allocation5 + $0x2a0] sm:$0xff]  }
  0x9d   : > { %4493 = vmatpush3.bf16.msra.mxu0 %v5163_v37  ;;  %4513 = vmatpush3.bf16.msra.mxu1 %v5164_v38  ;;  %v5220_v37 = vld [vmem:[#allocation5 + $0x2e0] sm:$0xff]   ;;  %v5221_v38 = vld [vmem:[#allocation5 + $0x2a8] sm:$0xff]  }
  0x9e   : > { %4494 = vmatprep.subr.bf16.mxu0 %v5537_v0  ;;  %4514 = vmatprep.subr.bf16.mxu1 %v5537_v0 }
  0x9f   : > { %4508 = vmatprep.mubr.msk.bf16.mxu0 %vm5538_vm0, %v5537_v0  ;;  %4528 = vmatprep.mubr.msk.bf16.mxu1 %vm5538_vm0, %v5537_v0 }
  0xa1   : > { %4495 = vmatpush3.bf16.msra.mxu0 %v5165_v39  ;;  %4515 = vmatpush3.bf16.msra.mxu1 %v5166_v40  ;;  %v5222_v39 = vld [vmem:[#allocation5 + $0x2e8] sm:$0xff]   ;;  %v5223_v40 = vld [vmem:[#allocation5 + $0x2b0] sm:$0xff]  }
  0xa2   : > { %4496 = vmatprep.subr.bf16.mxu0 %v5537_v0  ;;  %4516 = vmatprep.subr.bf16.mxu1 %v5537_v0 }
  0xa5   : > { %4497 = vmatpush3.bf16.msra.mxu0 %v5167_v41  ;;  %4517 = vmatpush3.bf16.msra.mxu1 %v5168_v42  ;;  %v5224_v41 = vld [vmem:[#allocation5 + $0x2f0] sm:$0xff]   ;;  %v5225_v42 = vld [vmem:[#allocation5 + $0x2b8] sm:$0xff]  }
  0xa6   : > { %4498 = vmatprep.subr.bf16.mxu0 %v5537_v0  ;;  %4518 = vmatprep.subr.bf16.mxu1 %v5537_v0 }
  0xa9   : > { %4499 = vmatpush3.bf16.msra.mxu0 %v5169_v43  ;;  %4519 = vmatpush3.bf16.msra.mxu1 %v5170_v44  ;;  %v5226_v43 = vld [vmem:[#allocation5 + $0x2f8] sm:$0xff]   ;;  %v223_v44 = vld [vmem:[%s5721_s8 + $0x28] sm:$0xf] }
  0xaa   : > { %4500 = vmatprep.subr.bf16.mxu0 %v5537_v0  ;;  %4520 = vmatprep.subr.bf16.mxu1 %v5537_v0 }
  0xad   : > { %4501 = vmatpush3.bf16.msra.mxu0 %v5171_v45  ;;  %4521 = vmatpush3.bf16.msra.mxu1 %v5172_v46  ;;  %v224_v45 = vld [vmem:[%s5721_s8 + $0x2c] sm:$0xf]  ;;  %v5227_v46 = vld [vmem:[#allocation5 + $0x300] sm:$0xff]  }
  0xae   : > { %4502 = vmatprep.subr.bf16.mxu0 %v5537_v0  ;;  %4522 = vmatprep.subr.bf16.mxu1 %v5537_v0 }
  0xb1   : > { %4503 = vmatpush3.bf16.msra.mxu0 %v5173_v47  ;;  %4523 = vmatpush3.bf16.msra.mxu1 %v5174_v48  ;;  %v5228_v47 = vld [vmem:[#allocation5 + $0x340] sm:$0xff]   ;;  %v5229_v48 = vld [vmem:[#allocation5 + $0x308] sm:$0xff]  }
  0xb2   : > { %4504 = vmatprep.subr.bf16.mxu0 %v5537_v0  ;;  %4524 = vmatprep.subr.bf16.mxu1 %v5537_v0 }
  0xb5   : > { %4505 = vmatpush3.bf16.msra.mxu0 %v5175_v49  ;;  %4525 = vmatpush3.bf16.msra.mxu1 %v5176_v50  ;;  %v5230_v49 = vld [vmem:[#allocation5 + $0x348] sm:$0xff]   ;;  %v5231_v50 = vld [vmem:[#allocation5 + $0x310] sm:$0xff]  }
  0xb6   : > { %4506 = vmatprep.subr.bf16.mxu0 %v5537_v0  ;;  %4526 = vmatprep.subr.bf16.mxu1 %v5537_v0 }
  0xb9   : > { %4507 = vmatpush3.bf16.msra.mxu0 %v5177_v51  ;;  %4527 = vmatpush3.bf16.msra.mxu1 %v5178_v52  ;;  %v5232_v51 = vld [vmem:[#allocation5 + $0x350] sm:$0xff]   ;;  %v5233_v52 = vld [vmem:[#allocation5 + $0x318] sm:$0xff]  }
  0xba   : > { %4532 = vmatprep.subr.bf16.mxu0 %v5537_v0  ;;  %4552 = vmatprep.subr.bf16.mxu1 %v5537_v0 }
  0xbc   : > { %4509 = vmatmul.mubr.bf16.vlgmr.msra.gmra.mrb[8].mxu0 %v217_v53  ;;  %4529 = vmatmul.mubr.bf16.vlgmr.msra.gmra.mrb[8].mxu1 %v218_v54  ;;  %v5234_v53 = vld [vmem:[#allocation5 + $0x358] sm:$0xff]   ;;  %v5235_v54 = vld [vmem:[#allocation5 + $0x320] sm:$0xff]  }
  0xbd   : > { %4533 = vmatpush3.bf16.msra.mxu0 %v5179_v55  ;;  %4553 = vmatpush3.bf16.msra.mxu1 %v5180_v56  ;;  %v5236_v55 = vld [vmem:[#allocation5 + $0x360] sm:$0xff]   ;;  %v5237_v56 = vld [vmem:[#allocation5 + $0x328] sm:$0xff]  }
  0xbe   : > { %4534 = vmatprep.subr.bf16.mxu0 %v5537_v0  ;;  %4554 = vmatprep.subr.bf16.mxu1 %v5537_v0 }
  0xbf   : > { %4548 = vmatprep.mubr.msk.bf16.mxu0 %vm5538_vm0, %v5537_v0  ;;  %4568 = vmatprep.mubr.msk.bf16.mxu1 %vm5538_vm0, %v5537_v0 }
  0xc1   : > { %4535 = vmatpush3.bf16.msra.mxu0 %v5181_v57  ;;  %4555 = vmatpush3.bf16.msra.mxu1 %v5182_v58  ;;  %v5238_v57 = vld [vmem:[#allocation5 + $0x368] sm:$0xff]   ;;  %v5239_v58 = vld [vmem:[#allocation5 + $0x330] sm:$0xff]  }
  0xc2   : > { %4536 = vmatprep.subr.bf16.mxu0 %v5537_v0  ;;  %4556 = vmatprep.subr.bf16.mxu1 %v5537_v0 }
  0xc5   : > { %4537 = vmatpush3.bf16.msra.mxu0 %v5183_v59  ;;  %4557 = vmatpush3.bf16.msra.mxu1 %v5184_v60  ;;  %v5240_v59 = vld [vmem:[#allocation5 + $0x370] sm:$0xff]   ;;  %v5241_v60 = vld [vmem:[#allocation5 + $0x338] sm:$0xff]  }
  0xc6   : > { %4538 = vmatprep.subr.bf16.mxu0 %v5537_v0  ;;  %4558 = vmatprep.subr.bf16.mxu1 %v5537_v0 }
  0xc9   : > { %4539 = vmatpush3.bf16.msra.mxu0 %v5185_v61  ;;  %4559 = vmatpush3.bf16.msra.mxu1 %v5186_v62  ;;  %v5242_v61 = vld [vmem:[#allocation5 + $0x378] sm:$0xff]   ;;  %v225_v62 = vld [vmem:[%s5721_s8 + $0x30] sm:$0xf] }
  0xca   : > { %4540 = vmatprep.subr.bf16.mxu0 %v5537_v0  ;;  %4560 = vmatprep.subr.bf16.mxu1 %v5537_v0 }
  0xcd   : > { %4541 = vmatpush3.bf16.msra.mxu0 %v5187_v63  ;;  %4561 = vmatpush3.bf16.msra.mxu1 %v5188_v1  ;;  %v226_v63 = vld [vmem:[%s5721_s8 + $0x34] sm:$0xf]  ;;  %v5243_v1 = vld [vmem:[#allocation5 + $0x380] sm:$0xff]  }
  0xce   : > { %4542 = vmatprep.subr.bf16.mxu0 %v5537_v0  ;;  %4562 = vmatprep.subr.bf16.mxu1 %v5537_v0 }
  0xd1   : > { %4543 = vmatpush3.bf16.msra.mxu0 %v5189_v2  ;;  %4563 = vmatpush3.bf16.msra.mxu1 %v5190_v3  ;;  %v5244_v2 = vld [vmem:[#allocation5 + $0x3c0] sm:$0xff]   ;;  %v5245_v3 = vld [vmem:[#allocation5 + $0x388] sm:$0xff]  }
  0xd2   : > { %4544 = vmatprep.subr.bf16.mxu0 %v5537_v0  ;;  %4564 = vmatprep.subr.bf16.mxu1 %v5537_v0 }
  0xd5   : > { %4545 = vmatpush3.bf16.msra.mxu0 %v5191_v4  ;;  %4565 = vmatpush3.bf16.msra.mxu1 %v5192_v5  ;;  %v5246_v4 = vld [vmem:[#allocation5 + $0x3c8] sm:$0xff]   ;;  %v5247_v5 = vld [vmem:[#allocation5 + $0x390] sm:$0xff]  }
  0xd6   : > { %4546 = vmatprep.subr.bf16.mxu0 %v5537_v0  ;;  %4566 = vmatprep.subr.bf16.mxu1 %v5537_v0 }
  0xd9   : > { %4547 = vmatpush3.bf16.msra.mxu0 %v5193_v6  ;;  %4567 = vmatpush3.bf16.msra.mxu1 %v5194_v7  ;;  %v5248_v6 = vld [vmem:[#allocation5 + $0x3d0] sm:$0xff]   ;;  %v5249_v7 = vld [vmem:[#allocation5 + $0x398] sm:$0xff]  }
  0xda   : > { %4572 = vmatprep.subr.bf16.mxu0 %v5537_v0  ;;  %4592 = vmatprep.subr.bf16.mxu1 %v5537_v0 }
  0xdc   : > { %4549 = vmatmul.mubr.bf16.vlgmr.msra.gmra.mrb[12].mxu0 %v219_v8  ;;  %4569 = vmatmul.mubr.bf16.vlgmr.msra.gmra.mrb[12].mxu1 %v220_v9  ;;  %v5250_v8 = vld [vmem:[#allocation5 + $0x3d8] sm:$0xff]   ;;  %v5251_v9 = vld [vmem:[#allocation5 + $0x3a0] sm:$0xff]  }
  0xdd   : > { %4573 = vmatpush3.bf16.msra.mxu0 %v5195_v10  ;;  %4593 = vmatpush3.bf16.msra.mxu1 %v5196_v11  ;;  %v5252_v10 = vld [vmem:[#allocation5 + $0x3e0] sm:$0xff]   ;;  %v5253_v11 = vld [vmem:[#allocation5 + $0x3a8] sm:$0xff]  }
  0xde   : > { %4574 = vmatprep.subr.bf16.mxu0 %v5537_v0  ;;  %4594 = vmatprep.subr.bf16.mxu1 %v5537_v0 }
  0xdf   : > { %4588 = vmatprep.mubr.msk.bf16.mxu0 %vm5538_vm0, %v5537_v0  ;;  %4608 = vmatprep.mubr.msk.bf16.mxu1 %vm5538_vm0, %v5537_v0 }
  0xe1   : > { %4575 = vmatpush3.bf16.msra.mxu0 %v5197_v12  ;;  %4595 = vmatpush3.bf16.msra.mxu1 %v5198_v13  ;;  %v5254_v12 = vld [vmem:[#allocation5 + $0x3e8] sm:$0xff]  }
  0xe2   : > { %4576 = vmatprep.subr.bf16.mxu0 %v5537_v0  ;;  %4596 = vmatprep.subr.bf16.mxu1 %v5537_v0 }
  0xe5   : > { %4577 = vmatpush3.bf16.msra.mxu0 %v5199_v14  ;;  %4597 = vmatpush3.bf16.msra.mxu1 %v5200_v15 }
  0xe6   : > { %4578 = vmatprep.subr.bf16.mxu0 %v5537_v0  ;;  %4598 = vmatprep.subr.bf16.mxu1 %v5537_v0 }
  0xe9   : > { %4579 = vmatpush3.bf16.msra.mxu0 %v5201_v16  ;;  %4599 = vmatpush3.bf16.msra.mxu1 %v5202_v17 }
  0xea   : > { %4580 = vmatprep.subr.bf16.mxu0 %v5537_v0  ;;  %4600 = vmatprep.subr.bf16.mxu1 %v5537_v0 }
  0xed   : > { %4581 = vmatpush3.bf16.msra.mxu0 %v5203_v18  ;;  %4601 = vmatpush3.bf16.msra.mxu1 %v5204_v19  ;;  %v5255_v19 = vld [vmem:[#allocation5 + $0x3b0] sm:$0xff]  }
  0xee   : > { %4582 = vmatprep.subr.bf16.mxu0 %v5537_v0  ;;  %4602 = vmatprep.subr.bf16.mxu1 %v5537_v0 }
  0xf1   : > { %4583 = vmatpush3.bf16.msra.mxu0 %v5205_v20  ;;  %4603 = vmatpush3.bf16.msra.mxu1 %v5206_v21 }
  0xf2   : > { %4584 = vmatprep.subr.bf16.mxu0 %v5537_v0  ;;  %4604 = vmatprep.subr.bf16.mxu1 %v5537_v0 }
  0xf5   : > { %4585 = vmatpush3.bf16.msra.mxu0 %v5207_v22  ;;  %4605 = vmatpush3.bf16.msra.mxu1 %v5208_v23  ;;  %v5256_v22 = vld [vmem:[#allocation5 + $0x3f0] sm:$0xff]  }
  0xf6   : > { %4586 = vmatprep.subr.bf16.mxu0 %v5537_v0  ;;  %4606 = vmatprep.subr.bf16.mxu1 %v5537_v0 }
  0xf9   : > { %4587 = vmatpush3.bf16.msra.mxu0 %v5209_v24  ;;  %4607 = vmatpush3.bf16.msra.mxu1 %v5210_v25  ;;  %v5257_v24 = vld [vmem:[#allocation5 + $0x3b8] sm:$0xff]  }
  0xfa   : > { %4612 = vmatprep.subr.bf16.mxu0 %v5537_v0  ;;  %4632 = vmatprep.subr.bf16.mxu1 %v5537_v0  ;;  %v5258_v25 = vld [vmem:[#allocation5 + $0x3f8] sm:$0xff]  }
  0xfc   : > { %4589 = vmatmul.mubr.bf16.vlgmr.msra.gmra.mrb[16].mxu0 %v221_v26  ;;  %4609 = vmatmul.mubr.bf16.vlgmr.msra.gmra.mrb[16].mxu1 %v222_v27  ;;  %v227_v26 = vld [vmem:[%s5721_s8 + $0x38] sm:$0xf]  ;;  %v5259_v27 = vld [vmem:[#allocation5 + $0x400] sm:$0xff]  }
  0xfd   : > { %4613 = vmatpush3.bf16.msra.mxu0 %v5211_v28  ;;  %4633 = vmatpush3.bf16.msra.mxu1 %v5212_v29  ;;  %v228_v28 = vld [vmem:[%s5721_s8 + $0x3c] sm:$0xf]  ;;  %v5260_v29 = vld [vmem:[#allocation5 + $0x440] sm:$0xff]  }
  0xfe   : > { %4614 = vmatprep.subr.bf16.mxu0 %v5537_v0  ;;  %4634 = vmatprep.subr.bf16.mxu1 %v5537_v0 }
  0xff   : > { %4628 = vmatprep.mubr.msk.bf16.mxu0 %vm5538_vm0, %v5537_v0  ;;  %4648 = vmatprep.mubr.msk.bf16.mxu1 %vm5538_vm0, %v5537_v0 }
 0x101   : > { %4615 = vmatpush3.bf16.msra.mxu0 %v5213_v30  ;;  %4635 = vmatpush3.bf16.msra.mxu1 %v5214_v31  ;;  %v5261_v30 = vld [vmem:[#allocation5 + $0x408] sm:$0xff]  }
 0x102   : > { %4616 = vmatprep.subr.bf16.mxu0 %v5537_v0  ;;  %4636 = vmatprep.subr.bf16.mxu1 %v5537_v0  ;;  %v5262_v31 = vld [vmem:[#allocation5 + $0x448] sm:$0xff]  }
 0x105   : > { %4617 = vmatpush3.bf16.msra.mxu0 %v5215_v32  ;;  %4637 = vmatpush3.bf16.msra.mxu1 %v5216_v33  ;;  %v5263_v32 = vld [vmem:[#allocation5 + $0x410] sm:$0xff]  }
 0x106   : > { %4618 = vmatprep.subr.bf16.mxu0 %v5537_v0  ;;  %4638 = vmatprep.subr.bf16.mxu1 %v5537_v0  ;;  %v5264_v33 = vld [vmem:[#allocation5 + $0x450] sm:$0xff]  }
 0x109   : > { %4619 = vmatpush3.bf16.msra.mxu0 %v5217_v34  ;;  %4639 = vmatpush3.bf16.msra.mxu1 %v5218_v35  ;;  %v5265_v34 = vld [vmem:[#allocation5 + $0x418] sm:$0xff]  }
 0x10a   : > { %4620 = vmatprep.subr.bf16.mxu0 %v5537_v0  ;;  %4640 = vmatprep.subr.bf16.mxu1 %v5537_v0  ;;  %v5266_v35 = vld [vmem:[#allocation5 + $0x458] sm:$0xff]  }
 0x10d   : > { %4621 = vmatpush3.bf16.msra.mxu0 %v5219_v36  ;;  %4641 = vmatpush3.bf16.msra.mxu1 %v5220_v37  ;;  %v5267_v36 = vld [vmem:[#allocation5 + $0x420] sm:$0xff]  }
 0x10e   : > { %4622 = vmatprep.subr.bf16.mxu0 %v5537_v0  ;;  %4642 = vmatprep.subr.bf16.mxu1 %v5537_v0  ;;  %v5268_v37 = vld [vmem:[#allocation5 + $0x460] sm:$0xff]  }
 0x111   : > { %4623 = vmatpush3.bf16.msra.mxu0 %v5221_v38  ;;  %4643 = vmatpush3.bf16.msra.mxu1 %v5222_v39  ;;  %v5269_v38 = vld [vmem:[#allocation5 + $0x428] sm:$0xff]  }
 0x112   : > { %4624 = vmatprep.subr.bf16.mxu0 %v5537_v0  ;;  %4644 = vmatprep.subr.bf16.mxu1 %v5537_v0  ;;  %v5270_v39 = vld [vmem:[#allocation5 + $0x468] sm:$0xff]  }
 0x115   : > { %4625 = vmatpush3.bf16.msra.mxu0 %v5223_v40  ;;  %4645 = vmatpush3.bf16.msra.mxu1 %v5224_v41 }
 0x116   : > { %4626 = vmatprep.subr.bf16.mxu0 %v5537_v0  ;;  %4646 = vmatprep.subr.bf16.mxu1 %v5537_v0 }
 0x119   : > { %4627 = vmatpush3.bf16.msra.mxu0 %v5225_v42  ;;  %4647 = vmatpush3.bf16.msra.mxu1 %v5226_v43 }
 0x11a   : > { %4652 = vmatprep.subr.bf16.mxu0 %v5537_v0  ;;  %4672 = vmatprep.subr.bf16.mxu1 %v5537_v0 }
 0x11c   : > { %4629 = vmatmul.mubr.bf16.vlgmr.msra.gmra.mrb[20].mxu0 %v223_v44  ;;  %4649 = vmatmul.mubr.bf16.vlgmr.msra.gmra.mrb[20].mxu1 %v224_v45 }
 0x11d   : > { %4653 = vmatpush3.bf16.msra.mxu0 %v5227_v46  ;;  %4673 = vmatpush3.bf16.msra.mxu1 %v5228_v47  ;;  %v5271_v46 = vld [vmem:[#allocation5 + $0x430] sm:$0xff]  }
 0x11e   : > { %4654 = vmatprep.subr.bf16.mxu0 %v5537_v0  ;;  %4674 = vmatprep.subr.bf16.mxu1 %v5537_v0 }
 0x11f   : > { %4668 = vmatprep.mubr.msk.bf16.mxu0 %vm5538_vm0, %v5537_v0  ;;  %4688 = vmatprep.mubr.msk.bf16.mxu1 %vm5538_vm0, %v5537_v0 }
 0x121   : > { %4655 = vmatpush3.bf16.msra.mxu0 %v5229_v48  ;;  %4675 = vmatpush3.bf16.msra.mxu1 %v5230_v49  ;;  %v5272_v49 = vld [vmem:[#allocation5 + $0x470] sm:$0xff]  }
 0x122   : > { %4656 = vmatprep.subr.bf16.mxu0 %v5537_v0  ;;  %4676 = vmatprep.subr.bf16.mxu1 %v5537_v0 }
 0x125   : > { %4657 = vmatpush3.bf16.msra.mxu0 %v5231_v50  ;;  %4677 = vmatpush3.bf16.msra.mxu1 %v5232_v51  ;;  %v5273_v51 = vld [vmem:[#allocation5 + $0x438] sm:$0xff]  }
 0x126   : > { %4658 = vmatprep.subr.bf16.mxu0 %v5537_v0  ;;  %4678 = vmatprep.subr.bf16.mxu1 %v5537_v0 }
 0x129   : > { %4659 = vmatpush3.bf16.msra.mxu0 %v5233_v52  ;;  %4679 = vmatpush3.bf16.msra.mxu1 %v5234_v53  ;;  %v5274_v52 = vld [vmem:[#allocation5 + $0x478] sm:$0xff]   ;;  %v229_v53 = vld [vmem:[%s5721_s8 + $0x40] sm:$0xf] }
 0x12a   : > { %4660 = vmatprep.subr.bf16.mxu0 %v5537_v0  ;;  %4680 = vmatprep.subr.bf16.mxu1 %v5537_v0 }
 0x12d   : > { %4661 = vmatpush3.bf16.msra.mxu0 %v5235_v54  ;;  %4681 = vmatpush3.bf16.msra.mxu1 %v5236_v55  ;;  %v5275_v54 = vld [vmem:[#allocation5 + $0x480] sm:$0xff]  }
 0x12e   : > { %4662 = vmatprep.subr.bf16.mxu0 %v5537_v0  ;;  %4682 = vmatprep.subr.bf16.mxu1 %v5537_v0  ;;  %v230_v55 = vld [vmem:[%s5721_s8 + $0x44] sm:$0xf] }
 0x131   : > { %4663 = vmatpush3.bf16.msra.mxu0 %v5237_v56  ;;  %4683 = vmatpush3.bf16.msra.mxu1 %v5238_v57  ;;  %v5276_v56 = vld [vmem:[#allocation5 + $0x4c0] sm:$0xff]   ;;  %v5277_v57 = vld [vmem:[#allocation5 + $0x488] sm:$0xff]  }
 0x132   : > { %4664 = vmatprep.subr.bf16.mxu0 %v5537_v0  ;;  %4684 = vmatprep.subr.bf16.mxu1 %v5537_v0 }
 0x135   : > { %4665 = vmatpush3.bf16.msra.mxu0 %v5239_v58  ;;  %4685 = vmatpush3.bf16.msra.mxu1 %v5240_v59  ;;  %v5278_v58 = vld [vmem:[#allocation5 + $0x4c8] sm:$0xff]   ;;  %v5279_v59 = vld [vmem:[#allocation5 + $0x490] sm:$0xff]  }
 0x136   : > { %4666 = vmatprep.subr.bf16.mxu0 %v5537_v0  ;;  %4686 = vmatprep.subr.bf16.mxu1 %v5537_v0 }
 0x139   : > { %4667 = vmatpush3.bf16.msra.mxu0 %v5241_v60  ;;  %4687 = vmatpush3.bf16.msra.mxu1 %v5242_v61  ;;  %v5280_v60 = vld [vmem:[#allocation5 + $0x4d0] sm:$0xff]   ;;  %v5281_v61 = vld [vmem:[#allocation5 + $0x498] sm:$0xff]  }
 0x13a   : > { %4692 = vmatprep.subr.bf16.mxu0 %v5537_v0  ;;  %4712 = vmatprep.subr.bf16.mxu1 %v5537_v0 }
 0x13c   : > { %4669 = vmatmul.mubr.bf16.vlgmr.msra.gmra.mrb[24].mxu0 %v225_v62  ;;  %4689 = vmatmul.mubr.bf16.vlgmr.msra.gmra.mrb[24].mxu1 %v226_v63  ;;  %v5282_v62 = vld [vmem:[#allocation5 + $0x4d8] sm:$0xff]   ;;  %v5283_v63 = vld [vmem:[#allocation5 + $0x4a0] sm:$0xff]  }
 0x13d   : > { %4693 = vmatpush3.bf16.msra.mxu0 %v5243_v1  ;;  %4713 = vmatpush3.bf16.msra.mxu1 %v5244_v2  ;;  %v5284_v1 = vld [vmem:[#allocation5 + $0x4e0] sm:$0xff]   ;;  %v5285_v2 = vld [vmem:[#allocation5 + $0x4a8] sm:$0xff]  }
 0x13e   : > { %4694 = vmatprep.subr.bf16.mxu0 %v5537_v0  ;;  %4714 = vmatprep.subr.bf16.mxu1 %v5537_v0 }
 0x13f   : > { %4708 = vmatprep.mubr.msk.bf16.mxu0 %vm5538_vm0, %v5537_v0  ;;  %4728 = vmatprep.mubr.msk.bf16.mxu1 %vm5538_vm0, %v5537_v0 }
 0x141   : > { %4695 = vmatpush3.bf16.msra.mxu0 %v5245_v3  ;;  %4715 = vmatpush3.bf16.msra.mxu1 %v5246_v4  ;;  %v5286_v3 = vld [vmem:[#allocation5 + $0x4e8] sm:$0xff]  }
 0x142   : > { %4696 = vmatprep.subr.bf16.mxu0 %v5537_v0  ;;  %4716 = vmatprep.subr.bf16.mxu1 %v5537_v0 }
 0x145   : > { %4697 = vmatpush3.bf16.msra.mxu0 %v5247_v5  ;;  %4717 = vmatpush3.bf16.msra.mxu1 %v5248_v6 }
 0x146   : > { %4698 = vmatprep.subr.bf16.mxu0 %v5537_v0  ;;  %4718 = vmatprep.subr.bf16.mxu1 %v5537_v0 }
 0x149   : > { %4699 = vmatpush3.bf16.msra.mxu0 %v5249_v7  ;;  %4719 = vmatpush3.bf16.msra.mxu1 %v5250_v8 }
 0x14a   : > { %4700 = vmatprep.subr.bf16.mxu0 %v5537_v0  ;;  %4720 = vmatprep.subr.bf16.mxu1 %v5537_v0 }
 0x14d   : > { %4701 = vmatpush3.bf16.msra.mxu0 %v5251_v9  ;;  %4721 = vmatpush3.bf16.msra.mxu1 %v5252_v10  ;;  %v5287_v10 = vld [vmem:[#allocation5 + $0x4b0] sm:$0xff]  }
 0x14e   : > { %4702 = vmatprep.subr.bf16.mxu0 %v5537_v0  ;;  %4722 = vmatprep.subr.bf16.mxu1 %v5537_v0 }
 0x14f   : > { %v839_v13 = vpop.f32.mrb[0].mxu0  ;;  %v927_v14 = vpop.f32.mrb[0].mxu1 }
 0x150   : > { %v4430_v15 = vpop.f32.mrb[1].mxu0  ;;  %v4032_v16 = vpack.c.bf16 %v927_v14, %v839_v13  ;;  %v4450_v17 = vpop.f32.mrb[1].mxu1  ;;  %v5288_v13 = vld [vmem:[#allocation5 + $0x4f0] sm:$0xff]  }
 0x151   : > { %v842_v18 = vpop.f32.mrb[2].mxu0  ;;  %4703 = vmatpush3.bf16.msra.mxu0 %v5253_v11  ;;  %v930_v20 = vpop.f32.mrb[2].mxu1  ;;  %4723 = vmatpush3.bf16.msra.mxu1 %v5254_v12  ;;  %v5289_v15 = vld [vmem:[#allocation5 + $0x4b8] sm:$0xff]   ;;  %v231_v17 = vld [vmem:[%s5721_s8 + $0x48] sm:$0xf] }
 0x152   : > { %v4431_v21 = vpop.f32.mrb[3].mxu0  ;;  %4704 = vmatprep.subr.bf16.mxu0 %v5537_v0  ;;  %4033 = vst [vmem:[%s5904_s17] sm:$0xff] %v4032_v16   ;;  %v4451_v23 = vpop.f32.mrb[3].mxu1  ;;  %4724 = vmatprep.subr.bf16.mxu1 %v5537_v0  ;;  %v5290_v16 = vld [vmem:[#allocation5 + $0x4f8] sm:$0xff]   ;;  %v5291_v18 = vld [vmem:[#allocation5 + $0x500] sm:$0xff]  }
 0x153   : > { %v5292_v20 = vld [vmem:[#allocation5 + $0x540] sm:$0xff]   ;;  %v5293_v21 = vld [vmem:[#allocation5 + $0x508] sm:$0xff]   ;;  %v5295_v23 = vld [vmem:[#allocation5 + $0x510] sm:$0xff]  }
 0x155   : > { %4705 = vmatpush3.bf16.msra.mxu0 %v5255_v19  ;;  %4725 = vmatpush3.bf16.msra.mxu1 %v5256_v22  ;;  %v232_v19 = vld [vmem:[%s5721_s8 + $0x4c] sm:$0xf] }
 0x156   : > { %4706 = vmatprep.subr.bf16.mxu0 %v5537_v0  ;;  %4726 = vmatprep.subr.bf16.mxu1 %v5537_v0  ;;  %v5294_v22 = vld [vmem:[#allocation5 + $0x548] sm:$0xff]  }
 0x159   : > { %4707 = vmatpush3.bf16.msra.mxu0 %v5257_v24  ;;  %4727 = vmatpush3.bf16.msra.mxu1 %v5258_v25  ;;  %v5296_v24 = vld [vmem:[#allocation5 + $0x550] sm:$0xff]   ;;  %v5297_v25 = vld [vmem:[#allocation5 + $0x518] sm:$0xff]  }
 0x15a   : > { %4732 = vmatprep.subr.bf16.mxu0 %v5537_v0  ;;  %4752 = vmatprep.subr.bf16.mxu1 %v5537_v0 }
 0x15c   : > { %4709 = vmatmul.mubr.bf16.vlgmr.msra.gmra.mrb[28].mxu0 %v227_v26  ;;  %4729 = vmatmul.mubr.bf16.vlgmr.msra.gmra.mrb[28].mxu1 %v228_v28  ;;  %v5298_v26 = vld [vmem:[#allocation5 + $0x558] sm:$0xff]   ;;  %v5300_v28 = vld [vmem:[#allocation5 + $0x560] sm:$0xff]  }
 0x15d   : > { %4733 = vmatpush3.bf16.msra.mxu0 %v5259_v27  ;;  %4753 = vmatpush3.bf16.msra.mxu1 %v5260_v29  ;;  %v5299_v27 = vld [vmem:[#allocation5 + $0x520] sm:$0xff]   ;;  %v5301_v29 = vld [vmem:[#allocation5 + $0x528] sm:$0xff]  }
 0x15e   : > { %4734 = vmatprep.subr.bf16.mxu0 %v5537_v0  ;;  %4754 = vmatprep.subr.bf16.mxu1 %v5537_v0 }
 0x15f   : > { %4748 = vmatprep.mubr.msk.bf16.mxu0 %vm5538_vm0, %v5537_v0  ;;  %4768 = vmatprep.mubr.msk.bf16.mxu1 %vm5538_vm0, %v5537_v0 }
 0x161   : > { %4735 = vmatpush3.bf16.msra.mxu0 %v5261_v30  ;;  %4755 = vmatpush3.bf16.msra.mxu1 %v5262_v31  ;;  %v5302_v30 = vld [vmem:[#allocation5 + $0x568] sm:$0xff]  }
 0x162   : > { %4736 = vmatprep.subr.bf16.mxu0 %v5537_v0  ;;  %4756 = vmatprep.subr.bf16.mxu1 %v5537_v0 }
 0x165   : > { %4737 = vmatpush3.bf16.msra.mxu0 %v5263_v32  ;;  %4757 = vmatpush3.bf16.msra.mxu1 %v5264_v33 }
 0x166   : > { %4738 = vmatprep.subr.bf16.mxu0 %v5537_v0  ;;  %4758 = vmatprep.subr.bf16.mxu1 %v5537_v0 }
 0x169   : > { %4739 = vmatpush3.bf16.msra.mxu0 %v5265_v34  ;;  %4759 = vmatpush3.bf16.msra.mxu1 %v5266_v35 }
 0x16a   : > { %4740 = vmatprep.subr.bf16.mxu0 %v5537_v0  ;;  %4760 = vmatprep.subr.bf16.mxu1 %v5537_v0 }
 0x16d   : > { %4741 = vmatpush3.bf16.msra.mxu0 %v5267_v36  ;;  %4761 = vmatpush3.bf16.msra.mxu1 %v5268_v37  ;;  %v5303_v37 = vld [vmem:[#allocation5 + $0x530] sm:$0xff]  }
 0x16e   : > { %4742 = vmatprep.subr.bf16.mxu0 %v5537_v0  ;;  %4762 = vmatprep.subr.bf16.mxu1 %v5537_v0 }
 0x16f   : > { %v1015_v40 = vpop.f32.mrb[4].mxu0  ;;  %v1103_v41 = vpop.f32.mrb[4].mxu1 }
 0x170   : > { %v4470_v42 = vpop.f32.mrb[5].mxu0  ;;  %v4037_v43 = vpack.c.bf16 %v1103_v41, %v1015_v40  ;;  %v4490_v44 = vpop.f32.mrb[5].mxu1  ;;  %v5304_v40 = vld [vmem:[#allocation5 + $0x570] sm:$0xff]  }
 0x171   : > { %v1018_v45 = vpop.f32.mrb[6].mxu0  ;;  %4743 = vmatpush3.bf16.msra.mxu0 %v5269_v38  ;;  %v1106_v47 = vpop.f32.mrb[6].mxu1  ;;  %4763 = vmatpush3.bf16.msra.mxu1 %v5270_v39  ;;  %v5305_v42 = vld [vmem:[#allocation5 + $0x538] sm:$0xff]   ;;  %v233_v44 = vld [vmem:[%s5721_s8 + $0x50] sm:$0xf] }
 0x172   : > { %v4471_v48 = vpop.f32.mrb[7].mxu0  ;;  %4744 = vmatprep.subr.bf16.mxu0 %v5537_v0  ;;  %4109 = vst [vmem:[%s5904_s17 + $0x8] sm:$0xff] %v4037_v43   ;;  %v4491_v50 = vpop.f32.mrb[7].mxu1  ;;  %4764 = vmatprep.subr.bf16.mxu1 %v5537_v0  ;;  %v5306_v43 = vld [vmem:[#allocation5 + $0x578] sm:$0xff]   ;;  %v5307_v45 = vld [vmem:[#allocation5 + $0x580] sm:$0xff]  }
 0x173   : > { %v5308_v47 = vld [vmem:[#allocation5 + $0x5c0] sm:$0xff]   ;;  %v5309_v48 = vld [vmem:[#allocation5 + $0x588] sm:$0xff]   ;;  %v5311_v50 = vld [vmem:[#allocation5 + $0x590] sm:$0xff]  }
 0x175   : > { %4745 = vmatpush3.bf16.msra.mxu0 %v5271_v46  ;;  %4765 = vmatpush3.bf16.msra.mxu1 %v5272_v49  ;;  %v234_v46 = vld [vmem:[%s5721_s8 + $0x54] sm:$0xf]  ;;  %v5310_v49 = vld [vmem:[#allocation5 + $0x5c8] sm:$0xff]  }
 0x176   : > { %4746 = vmatprep.subr.bf16.mxu0 %v5537_v0  ;;  %4766 = vmatprep.subr.bf16.mxu1 %v5537_v0 }
 0x179   : > { %4747 = vmatpush3.bf16.msra.mxu0 %v5273_v51  ;;  %4767 = vmatpush3.bf16.msra.mxu1 %v5274_v52  ;;  %v5312_v51 = vld [vmem:[#allocation5 + $0x5d0] sm:$0xff]   ;;  %v5313_v52 = vld [vmem:[#allocation5 + $0x598] sm:$0xff]  }
 0x17a   : > { %4772 = vmatprep.subr.bf16.mxu0 %v5537_v0  ;;  %4792 = vmatprep.subr.bf16.mxu1 %v5537_v0 }
 0x17c   : > { %4749 = vmatmul.mubr.bf16.vlgmr.msra.gmra.mrb[32].mxu0 %v229_v53  ;;  %4769 = vmatmul.mubr.bf16.vlgmr.msra.gmra.mrb[32].mxu1 %v230_v55  ;;  %v5314_v53 = vld [vmem:[#allocation5 + $0x5d8] sm:$0xff]   ;;  %v5316_v55 = vld [vmem:[#allocation5 + $0x5e0] sm:$0xff]  }
 0x17d   : > { %4773 = vmatpush3.bf16.msra.mxu0 %v5275_v54  ;;  %4793 = vmatpush3.bf16.msra.mxu1 %v5276_v56  ;;  %v5315_v54 = vld [vmem:[#allocation5 + $0x5a0] sm:$0xff]   ;;  %v5317_v56 = vld [vmem:[#allocation5 + $0x5a8] sm:$0xff]  }
 0x17e   : > { %4774 = vmatprep.subr.bf16.mxu0 %v5537_v0  ;;  %4794 = vmatprep.subr.bf16.mxu1 %v5537_v0 }
 0x17f   : > { %4788 = vmatprep.mubr.msk.bf16.mxu0 %vm5538_vm0, %v5537_v0  ;;  %4808 = vmatprep.mubr.msk.bf16.mxu1 %vm5538_vm0, %v5537_v0 }
 0x181   : > { %4775 = vmatpush3.bf16.msra.mxu0 %v5277_v57  ;;  %4795 = vmatpush3.bf16.msra.mxu1 %v5278_v58  ;;  %v5318_v57 = vld [vmem:[#allocation5 + $0x5e8] sm:$0xff]  }
 0x182   : > { %4776 = vmatprep.subr.bf16.mxu0 %v5537_v0  ;;  %4796 = vmatprep.subr.bf16.mxu1 %v5537_v0 }
 0x185   : > { %4777 = vmatpush3.bf16.msra.mxu0 %v5279_v59  ;;  %4797 = vmatpush3.bf16.msra.mxu1 %v5280_v60 }
 0x186   : > { %4778 = vmatprep.subr.bf16.mxu0 %v5537_v0  ;;  %4798 = vmatprep.subr.bf16.mxu1 %v5537_v0 }
 0x189   : > { %4779 = vmatpush3.bf16.msra.mxu0 %v5281_v61  ;;  %4799 = vmatpush3.bf16.msra.mxu1 %v5282_v62 }
 0x18a   : > { %4780 = vmatprep.subr.bf16.mxu0 %v5537_v0  ;;  %4800 = vmatprep.subr.bf16.mxu1 %v5537_v0 }
 0x18d   : > { %4781 = vmatpush3.bf16.msra.mxu0 %v5283_v63  ;;  %4801 = vmatpush3.bf16.msra.mxu1 %v5284_v1  ;;  %v5319_v1 = vld [vmem:[#allocation5 + $0x5b0] sm:$0xff]  }
 0x18e   : > { %4782 = vmatprep.subr.bf16.mxu0 %v5537_v0  ;;  %4802 = vmatprep.subr.bf16.mxu1 %v5537_v0 }
 0x18f   : > { %v1191_v4 = vpop.f32.mrb[8].mxu0  ;;  %v1279_v5 = vpop.f32.mrb[8].mxu1 }
 0x190   : > { %v4510_v6 = vpop.f32.mrb[9].mxu0  ;;  %v4042_v7 = vpack.c.bf16 %v1279_v5, %v1191_v4  ;;  %v4530_v8 = vpop.f32.mrb[9].mxu1  ;;  %v5320_v4 = vld [vmem:[#allocation5 + $0x5f0] sm:$0xff]  }
 0x191   : > { %v1194_v9 = vpop.f32.mrb[10].mxu0  ;;  %4783 = vmatpush3.bf16.msra.mxu0 %v5285_v2  ;;  %v1282_v11 = vpop.f32.mrb[10].mxu1  ;;  %4803 = vmatpush3.bf16.msra.mxu1 %v5286_v3  ;;  %v5321_v6 = vld [vmem:[#allocation5 + $0x5b8] sm:$0xff]  }
 0x192   : > { %v4511_v12 = vpop.f32.mrb[11].mxu0  ;;  %4784 = vmatprep.subr.bf16.mxu0 %v5537_v0  ;;  %4110 = vst [vmem:[%s5904_s17 + $0x10] sm:$0xff] %v4042_v7   ;;  %v4531_v14 = vpop.f32.mrb[11].mxu1  ;;  %4804 = vmatprep.subr.bf16.mxu1 %v5537_v0  ;;  %v5322_v7 = vld [vmem:[#allocation5 + $0x5f8] sm:$0xff]   ;;  %v5323_v9 = vld [vmem:[#allocation5 + $0x600] sm:$0xff]  }
 0x193   : > { %v235_v8 = vld [vmem:[%s5721_s8 + $0x58] sm:$0xf]  ;;  %v5324_v11 = vld [vmem:[#allocation5 + $0x640] sm:$0xff]   ;;  %v5325_v12 = vld [vmem:[#allocation5 + $0x608] sm:$0xff]  }
 0x194   : > { %v5327_v14 = vld [vmem:[#allocation5 + $0x610] sm:$0xff]  }
 0x195   : > { %4785 = vmatpush3.bf16.msra.mxu0 %v5287_v10  ;;  %4805 = vmatpush3.bf16.msra.mxu1 %v5288_v13  ;;  %v236_v10 = vld [vmem:[%s5721_s8 + $0x5c] sm:$0xf]  ;;  %v5326_v13 = vld [vmem:[#allocation5 + $0x648] sm:$0xff]  }
 0x196   : > { %4786 = vmatprep.subr.bf16.mxu0 %v5537_v0  ;;  %4806 = vmatprep.subr.bf16.mxu1 %v5537_v0 }
 0x199   : > { %4787 = vmatpush3.bf16.msra.mxu0 %v5289_v15  ;;  %4807 = vmatpush3.bf16.msra.mxu1 %v5290_v16  ;;  %v5328_v15 = vld [vmem:[#allocation5 + $0x650] sm:$0xff]   ;;  %v5329_v16 = vld [vmem:[#allocation5 + $0x618] sm:$0xff]  }
 0x19a   : > { %4812 = vmatprep.subr.bf16.mxu0 %v5537_v0  ;;  %4832 = vmatprep.subr.bf16.mxu1 %v5537_v0 }
 0x19c   : > { %4789 = vmatmul.mubr.bf16.vlgmr.msra.gmra.mrb[36].mxu0 %v231_v17  ;;  %4809 = vmatmul.mubr.bf16.vlgmr.msra.gmra.mrb[36].mxu1 %v232_v19  ;;  %v5330_v17 = vld [vmem:[#allocation5 + $0x658] sm:$0xff]   ;;  %v5332_v19 = vld [vmem:[#allocation5 + $0x660] sm:$0xff]  }
 0x19d   : > { %4813 = vmatpush3.bf16.msra.mxu0 %v5291_v18  ;;  %4833 = vmatpush3.bf16.msra.mxu1 %v5292_v20  ;;  %v5331_v18 = vld [vmem:[#allocation5 + $0x620] sm:$0xff]   ;;  %v5333_v20 = vld [vmem:[#allocation5 + $0x628] sm:$0xff]  }
 0x19e   : > { %4814 = vmatprep.subr.bf16.mxu0 %v5537_v0  ;;  %4834 = vmatprep.subr.bf16.mxu1 %v5537_v0 }
 0x19f   : > { %4828 = vmatprep.mubr.msk.bf16.mxu0 %vm5538_vm0, %v5537_v0  ;;  %4848 = vmatprep.mubr.msk.bf16.mxu1 %vm5538_vm0, %v5537_v0 }
 0x1a1   : > { %4815 = vmatpush3.bf16.msra.mxu0 %v5293_v21  ;;  %4835 = vmatpush3.bf16.msra.mxu1 %v5294_v22  ;;  %v5334_v21 = vld [vmem:[#allocation5 + $0x668] sm:$0xff]  }
 0x1a2   : > { %4816 = vmatprep.subr.bf16.mxu0 %v5537_v0  ;;  %4836 = vmatprep.subr.bf16.mxu1 %v5537_v0 }
 0x1a5   : > { %4817 = vmatpush3.bf16.msra.mxu0 %v5295_v23  ;;  %4837 = vmatpush3.bf16.msra.mxu1 %v5296_v24 }
 0x1a6   : > { %4818 = vmatprep.subr.bf16.mxu0 %v5537_v0  ;;  %4838 = vmatprep.subr.bf16.mxu1 %v5537_v0 }
 0x1a9   : > { %4819 = vmatpush3.bf16.msra.mxu0 %v5297_v25  ;;  %4839 = vmatpush3.bf16.msra.mxu1 %v5298_v26 }
 0x1aa   : > { %4820 = vmatprep.subr.bf16.mxu0 %v5537_v0  ;;  %4840 = vmatprep.subr.bf16.mxu1 %v5537_v0 }
 0x1ad   : > { %4821 = vmatpush3.bf16.msra.mxu0 %v5299_v27  ;;  %4841 = vmatpush3.bf16.msra.mxu1 %v5300_v28  ;;  %v5335_v28 = vld [vmem:[#allocation5 + $0x630] sm:$0xff]  }
 0x1ae   : > { %4822 = vmatprep.subr.bf16.mxu0 %v5537_v0  ;;  %4842 = vmatprep.subr.bf16.mxu1 %v5537_v0 }
 0x1af   : > { %v1367_v31 = vpop.f32.mrb[12].mxu0  ;;  %v1455_v32 = vpop.f32.mrb[12].mxu1 }
 0x1b0   : > { %v4550_v33 = vpop.f32.mrb[13].mxu0  ;;  %v4047_v34 = vpack.c.bf16 %v1455_v32, %v1367_v31  ;;  %v4570_v35 = vpop.f32.mrb[13].mxu1  ;;  %v5336_v31 = vld [vmem:[#allocation5 + $0x670] sm:$0xff]  }
 0x1b1   : > { %v1370_v36 = vpop.f32.mrb[14].mxu0  ;;  %4823 = vmatpush3.bf16.msra.mxu0 %v5301_v29  ;;  %v1458_v38 = vpop.f32.mrb[14].mxu1  ;;  %4843 = vmatpush3.bf16.msra.mxu1 %v5302_v30  ;;  %v5337_v33 = vld [vmem:[#allocation5 + $0x638] sm:$0xff]   ;;  %v237_v35 = vld [vmem:[%s5721_s8 + $0x60] sm:$0xf] }
 0x1b2   : > { %v4551_v39 = vpop.f32.mrb[15].mxu0  ;;  %4824 = vmatprep.subr.bf16.mxu0 %v5537_v0  ;;  %4111 = vst [vmem:[%s5904_s17 + $0x18] sm:$0xff] %v4047_v34   ;;  %v4571_v41 = vpop.f32.mrb[15].mxu1  ;;  %4844 = vmatprep.subr.bf16.mxu1 %v5537_v0  ;;  %v5338_v34 = vld [vmem:[#allocation5 + $0x678] sm:$0xff]   ;;  %v5339_v36 = vld [vmem:[#allocation5 + $0x680] sm:$0xff]  }
 0x1b3   : > { %v5340_v38 = vld [vmem:[#allocation5 + $0x6c0] sm:$0xff]   ;;  %v5341_v39 = vld [vmem:[#allocation5 + $0x688] sm:$0xff]   ;;  %v5343_v41 = vld [vmem:[#allocation5 + $0x690] sm:$0xff]  }
 0x1b5   : > { %4825 = vmatpush3.bf16.msra.mxu0 %v5303_v37  ;;  %4845 = vmatpush3.bf16.msra.mxu1 %v5304_v40  ;;  %v238_v37 = vld [vmem:[%s5721_s8 + $0x64] sm:$0xf]  ;;  %v5342_v40 = vld [vmem:[#allocation5 + $0x6c8] sm:$0xff]  }
 0x1b6   : > { %4826 = vmatprep.subr.bf16.mxu0 %v5537_v0  ;;  %4846 = vmatprep.subr.bf16.mxu1 %v5537_v0 }
 0x1b9   : > { %4827 = vmatpush3.bf16.msra.mxu0 %v5305_v42  ;;  %4847 = vmatpush3.bf16.msra.mxu1 %v5306_v43  ;;  %v5344_v42 = vld [vmem:[#allocation5 + $0x6d0] sm:$0xff]   ;;  %v5345_v43 = vld [vmem:[#allocation5 + $0x698] sm:$0xff]  }
 0x1ba   : > { %4852 = vmatprep.subr.bf16.mxu0 %v5537_v0  ;;  %4872 = vmatprep.subr.bf16.mxu1 %v5537_v0 }
 0x1bc   : > { %4829 = vmatmul.mubr.bf16.vlgmr.msra.gmra.mrb[40].mxu0 %v233_v44  ;;  %4849 = vmatmul.mubr.bf16.vlgmr.msra.gmra.mrb[40].mxu1 %v234_v46  ;;  %v5346_v44 = vld [vmem:[#allocation5 + $0x6d8] sm:$0xff]   ;;  %v5348_v46 = vld [vmem:[#allocation5 + $0x6e0] sm:$0xff]  }
 0x1bd   : > { %4853 = vmatpush3.bf16.msra.mxu0 %v5307_v45  ;;  %4873 = vmatpush3.bf16.msra.mxu1 %v5308_v47  ;;  %v5347_v45 = vld [vmem:[#allocation5 + $0x6a0] sm:$0xff]   ;;  %v5349_v47 = vld [vmem:[#allocation5 + $0x6a8] sm:$0xff]  }
 0x1be   : > { %4854 = vmatprep.subr.bf16.mxu0 %v5537_v0  ;;  %4874 = vmatprep.subr.bf16.mxu1 %v5537_v0 }
 0x1bf   : > { %4868 = vmatprep.mubr.msk.bf16.mxu0 %vm5538_vm0, %v5537_v0  ;;  %4888 = vmatprep.mubr.msk.bf16.mxu1 %vm5538_vm0, %v5537_v0 }
 0x1c1   : > { %4855 = vmatpush3.bf16.msra.mxu0 %v5309_v48  ;;  %4875 = vmatpush3.bf16.msra.mxu1 %v5310_v49  ;;  %v5350_v48 = vld [vmem:[#allocation5 + $0x6e8] sm:$0xff]  }
 0x1c2   : > { %4856 = vmatprep.subr.bf16.mxu0 %v5537_v0  ;;  %4876 = vmatprep.subr.bf16.mxu1 %v5537_v0 }
 0x1c5   : > { %4857 = vmatpush3.bf16.msra.mxu0 %v5311_v50  ;;  %4877 = vmatpush3.bf16.msra.mxu1 %v5312_v51 }
 0x1c6   : > { %4858 = vmatprep.subr.bf16.mxu0 %v5537_v0  ;;  %4878 = vmatprep.subr.bf16.mxu1 %v5537_v0 }
 0x1c9   : > { %4859 = vmatpush3.bf16.msra.mxu0 %v5313_v52  ;;  %4879 = vmatpush3.bf16.msra.mxu1 %v5314_v53 }
 0x1ca   : > { %4860 = vmatprep.subr.bf16.mxu0 %v5537_v0  ;;  %4880 = vmatprep.subr.bf16.mxu1 %v5537_v0 }
 0x1cd   : > { %4861 = vmatpush3.bf16.msra.mxu0 %v5315_v54  ;;  %4881 = vmatpush3.bf16.msra.mxu1 %v5316_v55  ;;  %v5351_v55 = vld [vmem:[#allocation5 + $0x6b0] sm:$0xff]  }
 0x1ce   : > { %4862 = vmatprep.subr.bf16.mxu0 %v5537_v0  ;;  %4882 = vmatprep.subr.bf16.mxu1 %v5537_v0 }
 0x1cf   : > { %v1543_v58 = vpop.f32.mrb[16].mxu0  ;;  %v1631_v59 = vpop.f32.mrb[16].mxu1 }
 0x1d0   : > { %v4590_v60 = vpop.f32.mrb[17].mxu0  ;;  %v4052_v61 = vpack.c.bf16 %v1631_v59, %v1543_v58  ;;  %v4610_v62 = vpop.f32.mrb[17].mxu1  ;;  %v5352_v58 = vld [vmem:[#allocation5 + $0x6f0] sm:$0xff]  }
 0x1d1   : > { %v1546_v63 = vpop.f32.mrb[18].mxu0  ;;  %4863 = vmatpush3.bf16.msra.mxu0 %v5317_v56  ;;  %v1634_v2 = vpop.f32.mrb[18].mxu1  ;;  %4883 = vmatpush3.bf16.msra.mxu1 %v5318_v57  ;;  %v5353_v60 = vld [vmem:[#allocation5 + $0x6b8] sm:$0xff]   ;;  %v239_v62 = vld [vmem:[%s5721_s8 + $0x68] sm:$0xf] }
 0x1d2   : > { %v4591_v3 = vpop.f32.mrb[19].mxu0  ;;  %4864 = vmatprep.subr.bf16.mxu0 %v5537_v0  ;;  %4112 = vst [vmem:[%s5904_s17 + $0x20] sm:$0xff] %v4052_v61   ;;  %v4611_v5 = vpop.f32.mrb[19].mxu1  ;;  %4884 = vmatprep.subr.bf16.mxu1 %v5537_v0  ;;  %v5354_v61 = vld [vmem:[#allocation5 + $0x6f8] sm:$0xff]   ;;  %v5355_v63 = vld [vmem:[#allocation5 + $0x700] sm:$0xff]  }
 0x1d3   : > { %v5356_v2 = vld [vmem:[#allocation5 + $0x740] sm:$0xff]   ;;  %v5357_v3 = vld [vmem:[#allocation5 + $0x708] sm:$0xff]   ;;  %v5359_v5 = vld [vmem:[#allocation5 + $0x710] sm:$0xff]  }
 0x1d5   : > { %4865 = vmatpush3.bf16.msra.mxu0 %v5319_v1  ;;  %4885 = vmatpush3.bf16.msra.mxu1 %v5320_v4  ;;  %v240_v1 = vld [vmem:[%s5721_s8 + $0x6c] sm:$0xf] }
 0x1d6   : > { %4866 = vmatprep.subr.bf16.mxu0 %v5537_v0  ;;  %4886 = vmatprep.subr.bf16.mxu1 %v5537_v0  ;;  %v5358_v4 = vld [vmem:[#allocation5 + $0x748] sm:$0xff]  }
 0x1d9   : > { %4867 = vmatpush3.bf16.msra.mxu0 %v5321_v6  ;;  %4887 = vmatpush3.bf16.msra.mxu1 %v5322_v7  ;;  %v5360_v6 = vld [vmem:[#allocation5 + $0x750] sm:$0xff]   ;;  %v5361_v7 = vld [vmem:[#allocation5 + $0x718] sm:$0xff]  }
 0x1da   : > { %4892 = vmatprep.subr.bf16.mxu0 %v5537_v0  ;;  %4912 = vmatprep.subr.bf16.mxu1 %v5537_v0 }
 0x1dc   : > { %4869 = vmatmul.mubr.bf16.vlgmr.msra.gmra.mrb[44].mxu0 %v235_v8  ;;  %4889 = vmatmul.mubr.bf16.vlgmr.msra.gmra.mrb[44].mxu1 %v236_v10  ;;  %v5362_v8 = vld [vmem:[#allocation5 + $0x758] sm:$0xff]   ;;  %v5364_v10 = vld [vmem:[#allocation5 + $0x760] sm:$0xff]  }
 0x1dd   : > { %4893 = vmatpush3.bf16.msra.mxu0 %v5323_v9  ;;  %4913 = vmatpush3.bf16.msra.mxu1 %v5324_v11  ;;  %v5363_v9 = vld [vmem:[#allocation5 + $0x720] sm:$0xff]   ;;  %v5365_v11 = vld [vmem:[#allocation5 + $0x728] sm:$0xff]  }
 0x1de   : > { %4894 = vmatprep.subr.bf16.mxu0 %v5537_v0  ;;  %4914 = vmatprep.subr.bf16.mxu1 %v5537_v0 }
 0x1df   : > { %4908 = vmatprep.mubr.msk.bf16.mxu0 %vm5538_vm0, %v5537_v0  ;;  %4928 = vmatprep.mubr.msk.bf16.mxu1 %vm5538_vm0, %v5537_v0 }
 0x1e1   : > { %4895 = vmatpush3.bf16.msra.mxu0 %v5325_v12  ;;  %4915 = vmatpush3.bf16.msra.mxu1 %v5326_v13  ;;  %v5366_v12 = vld [vmem:[#allocation5 + $0x768] sm:$0xff]  }
 0x1e2   : > { %4896 = vmatprep.subr.bf16.mxu0 %v5537_v0  ;;  %4916 = vmatprep.subr.bf16.mxu1 %v5537_v0 }
 0x1e5   : > { %4897 = vmatpush3.bf16.msra.mxu0 %v5327_v14  ;;  %4917 = vmatpush3.bf16.msra.mxu1 %v5328_v15 }
 0x1e6   : > { %4898 = vmatprep.subr.bf16.mxu0 %v5537_v0  ;;  %4918 = vmatprep.subr.bf16.mxu1 %v5537_v0 }
 0x1e9   : > { %4899 = vmatpush3.bf16.msra.mxu0 %v5329_v16  ;;  %4919 = vmatpush3.bf16.msra.mxu1 %v5330_v17 }
 0x1ea   : > { %4900 = vmatprep.subr.bf16.mxu0 %v5537_v0  ;;  %4920 = vmatprep.subr.bf16.mxu1 %v5537_v0 }
 0x1ed   : > { %4901 = vmatpush3.bf16.msra.mxu0 %v5331_v18  ;;  %4921 = vmatpush3.bf16.msra.mxu1 %v5332_v19  ;;  %v5367_v19 = vld [vmem:[#allocation5 + $0x730] sm:$0xff]  }
 0x1ee   : > { %4902 = vmatprep.subr.bf16.mxu0 %v5537_v0  ;;  %4922 = vmatprep.subr.bf16.mxu1 %v5537_v0 }
 0x1ef   : > { %v1719_v22 = vpop.f32.mrb[20].mxu0  ;;  %v1807_v23 = vpop.f32.mrb[20].mxu1 }
 0x1f0   : > { %v4630_v24 = vpop.f32.mrb[21].mxu0  ;;  %v4057_v25 = vpack.c.bf16 %v1807_v23, %v1719_v22  ;;  %v4650_v26 = vpop.f32.mrb[21].mxu1  ;;  %v5368_v22 = vld [vmem:[#allocation5 + $0x770] sm:$0xff]  }
 0x1f1   : > { %v1722_v27 = vpop.f32.mrb[22].mxu0  ;;  %4903 = vmatpush3.bf16.msra.mxu0 %v5333_v20  ;;  %v1810_v29 = vpop.f32.mrb[22].mxu1  ;;  %4923 = vmatpush3.bf16.msra.mxu1 %v5334_v21  ;;  %v5369_v24 = vld [vmem:[#allocation5 + $0x738] sm:$0xff]   ;;  %v241_v26 = vld [vmem:[%s5721_s8 + $0x70] sm:$0xf] }
 0x1f2   : > { %v4631_v30 = vpop.f32.mrb[23].mxu0  ;;  %4904 = vmatprep.subr.bf16.mxu0 %v5537_v0  ;;  %4113 = vst [vmem:[%s5904_s17 + $0x28] sm:$0xff] %v4057_v25   ;;  %v4651_v32 = vpop.f32.mrb[23].mxu1  ;;  %4924 = vmatprep.subr.bf16.mxu1 %v5537_v0  ;;  %v5370_v25 = vld [vmem:[#allocation5 + $0x778] sm:$0xff]   ;;  %v5371_v27 = vld [vmem:[#allocation5 + $0x780] sm:$0xff]  }
 0x1f3   : > { %v5372_v29 = vld [vmem:[#allocation5 + $0x7c0] sm:$0xff]   ;;  %v5373_v30 = vld [vmem:[#allocation5 + $0x788] sm:$0xff]   ;;  %v5375_v32 = vld [vmem:[#allocation5 + $0x790] sm:$0xff]  }
 0x1f5   : > { %4905 = vmatpush3.bf16.msra.mxu0 %v5335_v28  ;;  %4925 = vmatpush3.bf16.msra.mxu1 %v5336_v31  ;;  %v242_v28 = vld [vmem:[%s5721_s8 + $0x74] sm:$0xf]  ;;  %v5374_v31 = vld [vmem:[#allocation5 + $0x7c8] sm:$0xff]  }
 0x1f6   : > { %4906 = vmatprep.subr.bf16.mxu0 %v5537_v0  ;;  %4926 = vmatprep.subr.bf16.mxu1 %v5537_v0 }
 0x1f9   : > { %4907 = vmatpush3.bf16.msra.mxu0 %v5337_v33  ;;  %4927 = vmatpush3.bf16.msra.mxu1 %v5338_v34  ;;  %v5376_v33 = vld [vmem:[#allocation5 + $0x7d0] sm:$0xff]   ;;  %v5377_v34 = vld [vmem:[#allocation5 + $0x798] sm:$0xff]  }
 0x1fa   : > { %4932 = vmatprep.subr.bf16.mxu0 %v5537_v0  ;;  %4952 = vmatprep.subr.bf16.mxu1 %v5537_v0 }
 0x1fc   : > { %4909 = vmatmul.mubr.bf16.vlgmr.msra.gmra.mrb[48].mxu0 %v237_v35  ;;  %4929 = vmatmul.mubr.bf16.vlgmr.msra.gmra.mrb[48].mxu1 %v238_v37  ;;  %v5378_v35 = vld [vmem:[#allocation5 + $0x7d8] sm:$0xff]   ;;  %v5380_v37 = vld [vmem:[#allocation5 + $0x7e0] sm:$0xff]  }
 0x1fd   : > { %4933 = vmatpush3.bf16.msra.mxu0 %v5339_v36  ;;  %4953 = vmatpush3.bf16.msra.mxu1 %v5340_v38  ;;  %v5379_v36 = vld [vmem:[#allocation5 + $0x7a0] sm:$0xff]   ;;  %v5381_v38 = vld [vmem:[#allocation5 + $0x7a8] sm:$0xff]  }
 0x1fe   : > { %4934 = vmatprep.subr.bf16.mxu0 %v5537_v0  ;;  %4954 = vmatprep.subr.bf16.mxu1 %v5537_v0 }
 0x1ff   : > { %4948 = vmatprep.mubr.msk.bf16.mxu0 %vm5538_vm0, %v5537_v0  ;;  %4968 = vmatprep.mubr.msk.bf16.mxu1 %vm5538_vm0, %v5537_v0 }
 0x201   : > { %4935 = vmatpush3.bf16.msra.mxu0 %v5341_v39  ;;  %4955 = vmatpush3.bf16.msra.mxu1 %v5342_v40  ;;  %v5382_v39 = vld [vmem:[#allocation5 + $0x7e8] sm:$0xff]  }
 0x202   : > { %4936 = vmatprep.subr.bf16.mxu0 %v5537_v0  ;;  %4956 = vmatprep.subr.bf16.mxu1 %v5537_v0 }
 0x205   : > { %4937 = vmatpush3.bf16.msra.mxu0 %v5343_v41  ;;  %4957 = vmatpush3.bf16.msra.mxu1 %v5344_v42 }
 0x206   : > { %4938 = vmatprep.subr.bf16.mxu0 %v5537_v0  ;;  %4958 = vmatprep.subr.bf16.mxu1 %v5537_v0 }
 0x209   : > { %4939 = vmatpush3.bf16.msra.mxu0 %v5345_v43  ;;  %4959 = vmatpush3.bf16.msra.mxu1 %v5346_v44 }
 0x20a   : > { %4940 = vmatprep.subr.bf16.mxu0 %v5537_v0  ;;  %4960 = vmatprep.subr.bf16.mxu1 %v5537_v0 }
 0x20d   : > { %4941 = vmatpush3.bf16.msra.mxu0 %v5347_v45  ;;  %4961 = vmatpush3.bf16.msra.mxu1 %v5348_v46  ;;  %v5383_v46 = vld [vmem:[#allocation5 + $0x7b0] sm:$0xff]  }
 0x20e   : > { %4942 = vmatprep.subr.bf16.mxu0 %v5537_v0  ;;  %4962 = vmatprep.subr.bf16.mxu1 %v5537_v0 }
 0x20f   : > { %v1895_v49 = vpop.f32.mrb[24].mxu0  ;;  %v1983_v50 = vpop.f32.mrb[24].mxu1 }
 0x210   : > { %v4670_v51 = vpop.f32.mrb[25].mxu0  ;;  %v4062_v52 = vpack.c.bf16 %v1983_v50, %v1895_v49  ;;  %v4690_v53 = vpop.f32.mrb[25].mxu1  ;;  %v5384_v49 = vld [vmem:[#allocation5 + $0x7f0] sm:$0xff]  }
 0x211   : > { %v1898_v54 = vpop.f32.mrb[26].mxu0  ;;  %4943 = vmatpush3.bf16.msra.mxu0 %v5349_v47  ;;  %v1986_v56 = vpop.f32.mrb[26].mxu1  ;;  %4963 = vmatpush3.bf16.msra.mxu1 %v5350_v48  ;;  %v5385_v51 = vld [vmem:[#allocation5 + $0x7b8] sm:$0xff]  }
 0x212   : > { %v4671_v57 = vpop.f32.mrb[27].mxu0  ;;  %4944 = vmatprep.subr.bf16.mxu0 %v5537_v0  ;;  %4114 = vst [vmem:[%s5904_s17 + $0x30] sm:$0xff] %v4062_v52   ;;  %v4691_v59 = vpop.f32.mrb[27].mxu1  ;;  %4964 = vmatprep.subr.bf16.mxu1 %v5537_v0  ;;  %v5386_v52 = vld [vmem:[#allocation5 + $0x7f8] sm:$0xff]  }
 0x213   : > { %v243_v53 = vld [vmem:[%s5721_s8 + $0x78] sm:$0xf]  ;;  %v244_v54 = vld [vmem:[%s5721_s8 + $0x7c] sm:$0xf] }
 0x215   : > { %4945 = vmatpush3.bf16.msra.mxu0 %v5351_v55  ;;  %4965 = vmatpush3.bf16.msra.mxu1 %v5352_v58 }
 0x216   : > { %4946 = vmatprep.subr.bf16.mxu0 %v5537_v0  ;;  %4966 = vmatprep.subr.bf16.mxu1 %v5537_v0 }
 0x219   : > { %4947 = vmatpush3.bf16.msra.mxu0 %v5353_v60  ;;  %4967 = vmatpush3.bf16.msra.mxu1 %v5354_v61 }
 0x21a   : > { %4972 = vmatprep.subr.bf16.mxu0 %v5537_v0  ;;  %4992 = vmatprep.subr.bf16.mxu1 %v5537_v0 }
 0x21c   : > { %4949 = vmatmul.mubr.bf16.vlgmr.msra.gmra.mrb[52].mxu0 %v239_v62  ;;  %4969 = vmatmul.mubr.bf16.vlgmr.msra.gmra.mrb[52].mxu1 %v240_v1 }
 0x21d   : > { %4973 = vmatpush3.bf16.msra.mxu0 %v5355_v63  ;;  %4993 = vmatpush3.bf16.msra.mxu1 %v5356_v2 }
 0x21e   : > { %4974 = vmatprep.subr.bf16.mxu0 %v5537_v0  ;;  %4994 = vmatprep.subr.bf16.mxu1 %v5537_v0 }
 0x21f   : > { %4988 = vmatprep.mubr.msk.bf16.mxu0 %vm5538_vm0, %v5537_v0  ;;  %5008 = vmatprep.mubr.msk.bf16.mxu1 %vm5538_vm0, %v5537_v0 }
 0x221   : > { %4975 = vmatpush3.bf16.msra.mxu0 %v5357_v3  ;;  %4995 = vmatpush3.bf16.msra.mxu1 %v5358_v4 }
 0x222   : > { %4976 = vmatprep.subr.bf16.mxu0 %v5537_v0  ;;  %4996 = vmatprep.subr.bf16.mxu1 %v5537_v0 }
 0x225   : > { %4977 = vmatpush3.bf16.msra.mxu0 %v5359_v5  ;;  %4997 = vmatpush3.bf16.msra.mxu1 %v5360_v6 }
 0x226   : > { %4978 = vmatprep.subr.bf16.mxu0 %v5537_v0  ;;  %4998 = vmatprep.subr.bf16.mxu1 %v5537_v0 }
 0x229   : > { %4979 = vmatpush3.bf16.msra.mxu0 %v5361_v7  ;;  %4999 = vmatpush3.bf16.msra.mxu1 %v5362_v8 }
 0x22a   : > { %4980 = vmatprep.subr.bf16.mxu0 %v5537_v0  ;;  %5000 = vmatprep.subr.bf16.mxu1 %v5537_v0 }
 0x22d   : > { %4981 = vmatpush3.bf16.msra.mxu0 %v5363_v9  ;;  %5001 = vmatpush3.bf16.msra.mxu1 %v5364_v10 }
 0x22e   : > { %4982 = vmatprep.subr.bf16.mxu0 %v5537_v0  ;;  %5002 = vmatprep.subr.bf16.mxu1 %v5537_v0 }
 0x22f   : > { %v2071_v13 = vpop.f32.mrb[28].mxu0  ;;  %v2159_v14 = vpop.f32.mrb[28].mxu1 }
 0x230   : > { %v4710_v15 = vpop.f32.mrb[29].mxu0  ;;  %v4067_v16 = vpack.c.bf16 %v2159_v14, %v2071_v13  ;;  %v4730_v17 = vpop.f32.mrb[29].mxu1 }
 0x231   : > { %v2074_v18 = vpop.f32.mrb[30].mxu0  ;;  %4983 = vmatpush3.bf16.msra.mxu0 %v5365_v11  ;;  %v2162_v20 = vpop.f32.mrb[30].mxu1  ;;  %5003 = vmatpush3.bf16.msra.mxu1 %v5366_v12 }
 0x232   : > { %v4711_v21 = vpop.f32.mrb[31].mxu0  ;;  %4984 = vmatprep.subr.bf16.mxu0 %v5537_v0  ;;  %4115 = vst [vmem:[%s5904_s17 + $0x38] sm:$0xff] %v4067_v16   ;;  %v4731_v23 = vpop.f32.mrb[31].mxu1  ;;  %5004 = vmatprep.subr.bf16.mxu1 %v5537_v0 }
 0x235   : > { %4985 = vmatpush3.bf16.msra.mxu0 %v5367_v19  ;;  %5005 = vmatpush3.bf16.msra.mxu1 %v5368_v22 }
 0x236   : > { %4986 = vmatprep.subr.bf16.mxu0 %v5537_v0  ;;  %5006 = vmatprep.subr.bf16.mxu1 %v5537_v0 }
 0x239   : > { %4987 = vmatpush3.bf16.msra.mxu0 %v5369_v24  ;;  %5007 = vmatpush3.bf16.msra.mxu1 %v5370_v25 }
 0x23a   : > { %5012 = vmatprep.subr.bf16.mxu0 %v5537_v0  ;;  %5032 = vmatprep.subr.bf16.mxu1 %v5537_v0 }
 0x23c   : > { %4989 = vmatmul.mubr.bf16.vlgmr.msra.gmra.mrb[56].mxu0 %v241_v26  ;;  %5009 = vmatmul.mubr.bf16.vlgmr.msra.gmra.mrb[56].mxu1 %v242_v28 }
 0x23d   : > { %5013 = vmatpush3.bf16.msra.mxu0 %v5371_v27  ;;  %5033 = vmatpush3.bf16.msra.mxu1 %v5372_v29 }
 0x23e   : > { %5014 = vmatprep.subr.bf16.mxu0 %v5537_v0  ;;  %5034 = vmatprep.subr.bf16.mxu1 %v5537_v0 }
 0x23f   : > { %5028 = vmatprep.mubr.msk.bf16.mxu0 %vm5538_vm0, %v5537_v0  ;;  %5048 = vmatprep.mubr.msk.bf16.mxu1 %vm5538_vm0, %v5537_v0 }
 0x241   : > { %5015 = vmatpush3.bf16.msra.mxu0 %v5373_v30  ;;  %5035 = vmatpush3.bf16.msra.mxu1 %v5374_v31 }
 0x242   : > { %5016 = vmatprep.subr.bf16.mxu0 %v5537_v0  ;;  %5036 = vmatprep.subr.bf16.mxu1 %v5537_v0 }
 0x245   : > { %5017 = vmatpush3.bf16.msra.mxu0 %v5375_v32  ;;  %5037 = vmatpush3.bf16.msra.mxu1 %v5376_v33 }
 0x246   : > { %5018 = vmatprep.subr.bf16.mxu0 %v5537_v0  ;;  %5038 = vmatprep.subr.bf16.mxu1 %v5537_v0 }
 0x249   : > { %5019 = vmatpush3.bf16.msra.mxu0 %v5377_v34  ;;  %5039 = vmatpush3.bf16.msra.mxu1 %v5378_v35 }
 0x24a   : > { %5020 = vmatprep.subr.bf16.mxu0 %v5537_v0  ;;  %5040 = vmatprep.subr.bf16.mxu1 %v5537_v0 }
 0x24d   : > { %5021 = vmatpush3.bf16.msra.mxu0 %v5379_v36  ;;  %5041 = vmatpush3.bf16.msra.mxu1 %v5380_v37 }
 0x24e   : > { %5022 = vmatprep.subr.bf16.mxu0 %v5537_v0  ;;  %5042 = vmatprep.subr.bf16.mxu1 %v5537_v0 }
 0x24f   : > { %v2247_v40 = vpop.f32.mrb[32].mxu0  ;;  %v2335_v41 = vpop.f32.mrb[32].mxu1 }
 0x250   : > { %v4750_v42 = vpop.f32.mrb[33].mxu0  ;;  %v4072_v43 = vpack.c.bf16 %v2335_v41, %v2247_v40  ;;  %v4770_v44 = vpop.f32.mrb[33].mxu1 }
 0x251   : > { %v2250_v45 = vpop.f32.mrb[34].mxu0  ;;  %5023 = vmatpush3.bf16.msra.mxu0 %v5381_v38  ;;  %v2338_v47 = vpop.f32.mrb[34].mxu1  ;;  %5043 = vmatpush3.bf16.msra.mxu1 %v5382_v39 }
 0x252   : > { %v4751_v48 = vpop.f32.mrb[35].mxu0  ;;  %5024 = vmatprep.subr.bf16.mxu0 %v5537_v0  ;;  %4116 = vst [vmem:[%s5904_s17 + $0x40] sm:$0xff] %v4072_v43   ;;  %v4771_v50 = vpop.f32.mrb[35].mxu1  ;;  %5044 = vmatprep.subr.bf16.mxu1 %v5537_v0 }
 0x255   : > { %5025 = vmatpush3.bf16.msra.mxu0 %v5383_v46  ;;  %5045 = vmatpush3.bf16.msra.mxu1 %v5384_v49 }
 0x256   : > { %5026 = vmatprep.subr.bf16.mxu0 %v5537_v0  ;;  %5046 = vmatprep.subr.bf16.mxu1 %v5537_v0 }
 0x259   : > { %5027 = vmatpush3.bf16.msra.mxu0 %v5385_v51  ;;  %5047 = vmatpush3.bf16.msra.mxu1 %v5386_v52 }
 0x25c   : > { %5029 = vmatmul.mubr.bf16.vlgmr.msra.gmra.mrb[60].mxu0 %v243_v53  ;;  %5049 = vmatmul.mubr.bf16.vlgmr.msra.gmra.mrb[60].mxu1 %v244_v54 }
 0x26f   : > { %v2423_v55 = vpop.f32.mrb[36].mxu0  ;;  %v2511_v56 = vpop.f32.mrb[36].mxu1 }
 0x270   : > { %v4790_v57 = vpop.f32.mrb[37].mxu0  ;;  %v4077_v58 = vpack.c.bf16 %v2511_v56, %v2423_v55  ;;  %v4810_v59 = vpop.f32.mrb[37].mxu1 }
 0x271   : > { %v2426_v60 = vpop.f32.mrb[38].mxu0  ;;  %v2514_v61 = vpop.f32.mrb[38].mxu1 }
 0x272   : > { %v4791_v62 = vpop.f32.mrb[39].mxu0  ;;  %4117 = vst [vmem:[%s5904_s17 + $0x48] sm:$0xff] %v4077_v58   ;;  %v4811_v63 = vpop.f32.mrb[39].mxu1 }
 0x28f   : > { %v2599_v1 = vpop.f32.mrb[40].mxu0  ;;  %v2687_v2 = vpop.f32.mrb[40].mxu1 }
 0x290   : > { %v4830_v0 = vpop.f32.mrb[41].mxu0  ;;  %v4082_v3 = vpack.c.bf16 %v2687_v2, %v2599_v1  ;;  %v4850_v4 = vpop.f32.mrb[41].mxu1 }
 0x291   : > { %v2602_v5 = vpop.f32.mrb[42].mxu0  ;;  %v2690_v6 = vpop.f32.mrb[42].mxu1 }
 0x292   : > { %v4831_v7 = vpop.f32.mrb[43].mxu0  ;;  %4118 = vst [vmem:[%s5904_s17 + $0x50] sm:$0xff] %v4082_v3   ;;  %v4851_v8 = vpop.f32.mrb[43].mxu1 }
 0x2af   : > { %v2775_v9 = vpop.f32.mrb[44].mxu0  ;;  %v2863_v10 = vpop.f32.mrb[44].mxu1 }
 0x2b0   : > { %v4870_v11 = vpop.f32.mrb[45].mxu0  ;;  %v4087_v12 = vpack.c.bf16 %v2863_v10, %v2775_v9  ;;  %v4890_v13 = vpop.f32.mrb[45].mxu1 }
 0x2b1   : > { %v2778_v14 = vpop.f32.mrb[46].mxu0  ;;  %v2866_v15 = vpop.f32.mrb[46].mxu1 }
 0x2b2   : > { %v4871_v16 = vpop.f32.mrb[47].mxu0  ;;  %4119 = vst [vmem:[%s5904_s17 + $0x58] sm:$0xff] %v4087_v12   ;;  %v4891_v17 = vpop.f32.mrb[47].mxu1 }
 0x2cf   : > { %v2951_v18 = vpop.f32.mrb[48].mxu0  ;;  %v3039_v19 = vpop.f32.mrb[48].mxu1 }
 0x2d0   : > { %v4910_v20 = vpop.f32.mrb[49].mxu0  ;;  %v4092_v21 = vpack.c.bf16 %v3039_v19, %v2951_v18  ;;  %v4930_v22 = vpop.f32.mrb[49].mxu1 }
 0x2d1   : > { %v2954_v23 = vpop.f32.mrb[50].mxu0  ;;  %v3042_v24 = vpop.f32.mrb[50].mxu1 }
 0x2d2   : > { %v4911_v25 = vpop.f32.mrb[51].mxu0  ;;  %4120 = vst [vmem:[%s5904_s17 + $0x60] sm:$0xff] %v4092_v21   ;;  %v4931_v26 = vpop.f32.mrb[51].mxu1 }
 0x2ef   : > { %v3127_v27 = vpop.f32.mrb[52].mxu0  ;;  %v3215_v28 = vpop.f32.mrb[52].mxu1 }
 0x2f0   : > { %v4950_v29 = vpop.f32.mrb[53].mxu0  ;;  %v4097_v30 = vpack.c.bf16 %v3215_v28, %v3127_v27  ;;  %v4970_v31 = vpop.f32.mrb[53].mxu1 }
 0x2f1   : > { %v3130_v32 = vpop.f32.mrb[54].mxu0  ;;  %v3218_v33 = vpop.f32.mrb[54].mxu1 }
 0x2f2   : > { %v4951_v34 = vpop.f32.mrb[55].mxu0  ;;  %4121 = vst [vmem:[%s5904_s17 + $0x68] sm:$0xff] %v4097_v30   ;;  %v4971_v35 = vpop.f32.mrb[55].mxu1 }
 0x30f   : > { %v3303_v36 = vpop.f32.mrb[56].mxu0  ;;  %v3391_v37 = vpop.f32.mrb[56].mxu1 }
 0x310   : > { %v4990_v38 = vpop.f32.mrb[57].mxu0  ;;  %v4102_v39 = vpack.c.bf16 %v3391_v37, %v3303_v36  ;;  %v5010_v40 = vpop.f32.mrb[57].mxu1 }
 0x311   : > { %v3306_v41 = vpop.f32.mrb[58].mxu0  ;;  %v3394_v42 = vpop.f32.mrb[58].mxu1 }
 0x312   : > { %v4991_v43 = vpop.f32.mrb[59].mxu0  ;;  %4122 = vst [vmem:[%s5904_s17 + $0x70] sm:$0xff] %v4102_v39   ;;  %v5011_v44 = vpop.f32.mrb[59].mxu1 }
 0x32f   : > { %v3479_v45 = vpop.f32.mrb[60].mxu0  ;;  %v3567_v46 = vpop.f32.mrb[60].mxu1 }
 0x330   : > { %v5030_v47 = vpop.f32.mrb[61].mxu0  ;;  %v4107_v48 = vpack.c.bf16 %v3567_v46, %v3479_v45  ;;  %v5050_v49 = vpop.f32.mrb[61].mxu1 }
 0x331   : > { %v3482_v50 = vpop.f32.mrb[62].mxu0  ;;  %v3570_v51 = vpop.f32.mrb[62].mxu1 }
 0x332   : > { %v5031_v52 = vpop.f32.mrb[63].mxu0  ;;  %4123 = vst [vmem:[%s5904_s17 + $0x78] sm:$0xff] %v4107_v48   ;;  %v5051_v53 = vpop.f32.mrb[63].mxu1 }
 0x333   : > { %5458 = shalt.err (!%p5455_p5)
}
 0x334   : > { %s5459_s23 = scalar_lea.hbm %s6107_s4, 2048  ;;  %s5463_s26 = scalar_lea.hbm %s6161_s2, 4096 }
 0x335   : > { %p5460_p9 = scmp.ne.s32.totalorder %s6107_s4, %s5459_s23  ;;  %p5464_p3 = scmp.lt.u32.totalorder %s6107_s4, %s6161_s2 }
 0x336   : > { %p5465_p7 = scmp.lt.u32.totalorder %s5463_s26, %s5459_s23  ;;  %p5467_p4 = scmp.lt.u32.totalorder %s5459_s23, %s6107_s4 }
 0x337   : > { %p5461_p1 = pnand %p5460_p9, %p5656_p10 }
 0x338   : > { %p5466_p13 = por %p5465_p7, %p5464_p3 }
 0x339   : > { %p5462_p2 = pneg %p5461_p1 }
 0x33a   : > { %p5468_p6 = por %p5467_p4, %p5466_p13 }
 0x33c   : > { %p5469_p8 = pnand %p5468_p6, %p5462_p2 }
 0x33e   : > { %5472 = shalt.err (!%p5469_p8)
}
 0x33f   : > { %s5540_s8 = smov 64   ;;  %s5541_s17 = smov 4  }
 0x340   : > { %5058 = dma.vmem_to_hbm [thread:$0]  (%p5656_p10), %s6109_s21, 2048, %s6107_s4, %s3638_s12, %s5540_s8, %s5540_s8, %s5541_s17  }
 0x341 PF: > { %s3668_s19 = sand.u32 1, %s5511_s9   ;;  %p6179_p12 = scmp.ne.s32.totalorder %s6169_s20, 0 }
 0x342   : > { %p6180_p11 = scmp.ge.s32.totalorder %s5531_s14, 2  ;;  %s3669_s6 = scalar_lea.sflag [#allocation4], %s3668_s19 }
 0x344   : > { %p5069_p0 = pnand %p6180_p11, %p6179_p12 }
 0x346   : > { %5506 = dma.done.wait (!%p5069_p0), %s3669_s6, 2048  }
 0x347   : > { %5508 = vsyncadd (!%p5069_p0), %s3669_s6, 4294965248  ;;  %s19_s14 = sadd.s32 1, %s5531_s14   ;;  %s6181_s9 = smov %s5515_s10 }
 0x348   : > { %p16_p5 = scmp.ge.s32.totalorder %s19_s14, 4   ;;  %s6182_s10 = smov %s5519_s11 }
 0x349   : > { %s6183_s11 = smov %s5665_s28  ;;  %s6184_s12 = smov %s5527_s13 }
 0x34a   : > { %s6185_s13 = smov %s6187_s25  ;;  %18 = sbr.rel (!%p16_p5) target bundleno = 7 (0x7), region = 78 }
 0x351   :  { %3674 = vsyncpa [#allocation3], 1 }
 0x352   :  { %3676 = vsyncpa [#allocation3 + $0x1], 1 }
 0x353   :  { %3677 = vsyncpa [#allocation6], 1 }
 0x354   :  { %3678 = vsyncpa [#allocation4], 1 }
 0x355   :  { %3680 = vsyncpa [#allocation4 + $0x1], 1 }

</bundles_post_ra>
